<compile_context>
chip_gen: v6e
topology: v6e:2x2x1
jax: 0.10.0
libtpu: 0.0.40
codegen_flags: <defaults>
</compile_context>

<pallas_src>
import functools

import jax
import jax.numpy as jnp
from jax import lax
from jax.experimental import pallas as pl
from jax.experimental.pallas import tpu as pltpu

_LN_EPS = 1e-5       # torch nn.LayerNorm default
_NORM_EPS = 1e-8     # _norm_no_nan clamp


def _round_up(x, m):
    return (x + m - 1) // m * m


def _block_diag3(w):
    a, b = w.shape
    z = jnp.zeros((a, b), w.dtype)
    return jnp.concatenate(
        [jnp.concatenate([w, z, z], axis=1),
         jnp.concatenate([z, w, z], axis=1),
         jnp.concatenate([z, z, w], axis=1)], axis=0)


def _kernel_sigmoid(x):
    # exp lowers to the EUP; divide stays on the VPU (exact, keeps tolerance
    # tight).  pl.reciprocal(1+exp(-x), approx=True) is an optional EUP-only
    # variant if the consumer tolerates ~1e-3 gate error.
    return 1.0 / (1.0 + jnp.exp(-x))


# ----------------------------------------------------------------------------
# Fused GVPLinear(vector_gate=True) + GVPLayerNorm (+ residual, + mask) kernel
# ----------------------------------------------------------------------------
def _gvp_kernel(*refs, vo, has_residual):
    if has_residual:
        (xs_ref, xv_ref, res_ref, mask_ref,
         wl_ref, wr_ref, wdot_ref, bdot_ref,
         wss_ref, wsvd_ref, bs_ref,
         whv_ref, wsv_ref, bsv_ref,
         g_ref, b_ref, out_ref) = refs
    else:
        (xs_ref, xv_ref, mask_ref,
         wl_ref, wr_ref, wdot_ref, bdot_ref,
         wss_ref, wsvd_ref, bs_ref,
         whv_ref, wsv_ref, bsv_ref,
         g_ref, b_ref, out_ref) = refs
        res_ref = None

    f32 = jnp.float32
    cdt = xv_ref.dtype                       # compute dtype (bf16 by default)

    s = xs_ref[...]                          # [T, Si]
    vflat = xv_ref[...]                      # [T, 3*Vi] (component-major blocks)

    # --- dot-product branch: two block-diagonal matmuls, f32 accumulation ---
    vl = jnp.dot(vflat, wl_ref[...], preferred_element_type=f32)    # [T, 3H]
    vr = jnp.dot(vflat, wr_ref[...], preferred_element_type=f32)    # [T, 3H]
    prod = (vl * vr).astype(cdt)
    # wdot3 = vstack([w_dot]x3): summing the component blocks is folded into
    # the matmul itself.
    vd = jnp.dot(prod, wdot_ref[...], preferred_element_type=f32) + bdot_ref[...]

    # --- ws(cat([s, vd])) as two matmuls (no in-kernel concat of inputs) ---
    s_lin = (jnp.dot(s, wss_ref[...], preferred_element_type=f32)
             + jnp.dot(vd.astype(cdt), wsvd_ref[...], preferred_element_type=f32)
             + bs_ref[...])                                          # [T, So]

    # --- vector gate: sigmoid(wsv(sigmoid(s))) ---
    gate_pre = (jnp.dot(_kernel_sigmoid(s_lin).astype(cdt), wsv_ref[...],
                        preferred_element_type=f32) + bsv_ref[...])  # [T, Vo]
    gate = _kernel_sigmoid(gate_pre)

    # --- vector path: wh and wv folded into one [3Vi, 3Vo] block-diag matmul ---
    vout = jnp.dot(vflat, whv_ref[...], preferred_element_type=f32)  # [T, 3Vo]
    vout = vout * jnp.concatenate([gate, gate, gate], axis=-1)

    # scalar activation (ReLU); dropout == identity in eval mode
    s_act = jnp.maximum(s_lin, 0.0)

    # --- GVPLayerNorm ---
    vsq = (vout[:, :vo] * vout[:, :vo]
           + vout[:, vo:2 * vo] * vout[:, vo:2 * vo]
           + vout[:, 2 * vo:] * vout[:, 2 * vo:])                    # [T, Vo]
    vsq = jnp.maximum(vsq, _NORM_EPS)
    inv_vn = lax.rsqrt(jnp.mean(vsq, axis=-1, keepdims=True))        # [T, 1]

    mu = jnp.mean(s_act, axis=-1, keepdims=True)
    var = jnp.mean(jnp.square(s_act - mu), axis=-1, keepdims=True)
    s_norm = (s_act - mu) * lax.rsqrt(var + _LN_EPS) * g_ref[...] + b_ref[...]

    # --- fused lane-dense output slab [T, So + 3Vo] ---
    slab = jnp.concatenate([s_norm, vout * inv_vn], axis=-1)
    if has_residual:
        slab = res_ref[...].astype(f32) + slab
    out_ref[...] = (slab * mask_ref[...]).astype(out_ref.dtype)


# ----------------------------------------------------------------------------
# Wrapper: weight prep + tiling + pallas_call
# ----------------------------------------------------------------------------
def _prep_weights(p, compute_dtype):
    f32 = jnp.float32
    cd = compute_dtype
    wl = p["w_left"].astype(f32)
    wr = p["w_right"].astype(f32)
    whv = p["w_h"].astype(f32) @ p["w_v"].astype(f32)          # [Vi, Vo] fold
    return dict(
        wl=_block_diag3(wl).astype(cd),                        # [3Vi, 3H]
        wr=_block_diag3(wr).astype(cd),                        # [3Vi, 3H]
        wdot3=jnp.concatenate([p["w_dot"]] * 3, axis=0).astype(cd),   # [3H, H]
        b_dot=p["b_dot"].astype(f32),
        w_s_s=p["w_s_s"].astype(cd),
        w_s_vd=p["w_s_vd"].astype(cd),
        b_s=p["b_s"].astype(f32),
        whv=_block_diag3(whv).astype(cd),                      # [3Vi, 3Vo]
        w_sv=p["w_sv"].astype(cd),
        b_sv=p["b_sv"].astype(f32),
        ln_g=p["ln_g"].astype(f32),
        ln_b=p["ln_b"].astype(f32),
    )


def gvp_block(xs, xv, res, mask, pw, *, out_dtype, tile_rows=512):
    """(residual + LayerNorm(GVP(xs, xv))) * mask, fused.

    xs:   [R, Si]        scalar features (compute dtype)
    xv:   [R, 3*Vi]      vector features, component-major blocks of Vi channels
    res:  [R, So+3*Vo]   residual slab (same layout as the output) or None
    mask: [R, 1]         f32 row mask
    Returns slab [R, So + 3*Vo] in out_dtype.
    """
    R, si = xs.shape
    vi3 = xv.shape[1]
    so = pw["w_s_s"].shape[1]
    vo = pw["w_sv"].shape[1]
    out_cols = so + 3 * vo
    cdt = xs.dtype

    # sublane packing factor of the compute dtype (8 f32 / 16 bf16 / 32 int8)
    isz = jnp.dtype(cdt).itemsize
    align = 8 if isz == 4 else (16 if isz == 2 else 32)

    # per-row bytes of the row-tiled (double-buffered) blocks
    row_bytes = (si + vi3) * isz + 4 + out_cols * jnp.dtype(out_dtype).itemsize
    if res is not None:
        row_bytes += out_cols * jnp.dtype(res.dtype).itemsize

    # tile: as big as the budget allows, >=2 grid steps when R allows (so the
    # "parallel" grid dim can shard across v7x's two TensorCores)
    tile = min(tile_rows, _round_up(max((R + 1) // 2, 1), align))
    tile = max(tile, align)
    budget = 20 << 20                      # double-buffered row-block budget
    while tile > align and 2 * tile * row_bytes > budget:
        tile = max(align, _round_up(tile // 2, align))

    Rp = _round_up(R, tile)
    if Rp != R:
        pad = Rp - R
        xs = jnp.pad(xs, ((0, pad), (0, 0)))
        xv = jnp.pad(xv, ((0, pad), (0, 0)))
        mask = jnp.pad(mask, ((0, pad), (0, 0)))
        if res is not None:
            res = jnp.pad(res, ((0, pad), (0, 0)))

    grid = (Rp // tile,)

    def row(c):
        return pl.BlockSpec((tile, c), lambda i: (i, 0))

    def wspec(a):
        return pl.BlockSpec(a.shape, lambda i: (0,) * a.ndim)

    w_names = ["wl", "wr", "wdot3", "b_dot", "w_s_s", "w_s_vd", "b_s",
               "whv", "w_sv", "b_sv", "ln_g", "ln_b"]
    w_args = [pw[n] for n in w_names]

    in_specs = [row(si), row(vi3)]
    args = [xs, xv]
    if res is not None:
        in_specs.append(row(out_cols))
        args.append(res)
    in_specs.append(row(1))
    args.append(mask)
    in_specs += [wspec(a) for a in w_args]
    args += w_args

    weight_bytes = sum(int(a.size) * a.dtype.itemsize for a in w_args)
    vmem_limit = int(min(max(2 * tile * row_bytes + 2 * weight_bytes + (16 << 20),
                             32 << 20),
                         64 << 20))

    out = pl.pallas_call(
        functools.partial(_gvp_kernel, vo=vo, has_residual=res is not None),
        out_shape=jax.ShapeDtypeStruct((Rp, out_cols), out_dtype),
        grid_spec=pltpu.PrefetchScalarGridSpec(
            num_scalar_prefetch=0,
            grid=grid,
            in_specs=in_specs,
            out_specs=row(out_cols),
        ),
        compiler_params=pltpu.CompilerParams(
            dimension_semantics=("parallel",),
            vmem_limit_bytes=vmem_limit,
        ),
    )(*args)

    return out[:R] if Rp != R else out


# ----------------------------------------------------------------------------
# GVPMPNN forward (gather / segment-sum stay in XLA; GVP blocks in Pallas)
# ----------------------------------------------------------------------------
def gvp_mpnn_forward(params, s, v, edge_index, node_mask, edge_mask,
                     *, compute_dtype=jnp.bfloat16):
    """
    s: [N, Ds], v: [N, Dv, 3] (torch layout), edge_index: [2, E] int32,
    node_mask: [N, 1] or None, edge_mask: [E, 1] or None.
    Returns (out_s [N, Ds], out_v [N, Dv, 3]).
    """
    f32 = jnp.float32
    N, ds = s.shape
    dv = v.shape[1]
    io_dtype = s.dtype
    E = edge_index.shape[1]

    hid_s = params["edge"]["ln_g"].shape[-1]
    hid_v = params["edge"]["w_sv"].shape[-1]

    pw_edge = _prep_weights(params["edge"], compute_dtype)
    pw_node = _prep_weights(params["node"], compute_dtype)

    # Sort edges by receiver so aggregation is a sorted segment-sum (sum is
    # permutation invariant, so reordering the edges is safe).
    send, rec = edge_index[0], edge_index[1]
    order = jnp.argsort(rec)
    send, rec = send[order], rec[order]
    emask = (jnp.ones((E, 1), f32) if edge_mask is None
             else edge_mask.astype(f32))[order]

    cd = compute_dtype
    s_c = s.astype(cd)
    vx = v[:, :, 0].astype(cd)
    vy = v[:, :, 1].astype(cd)
    vz = v[:, :, 2].astype(cd)

    # --- message(x_i, x_j): gather + concat (XLA), edge model (Pallas) ---
    # TODO(synk): fold the edge gather into the kernel via scalar prefetch.
    xs_e = jnp.concatenate([s_c[rec], s_c[send]], axis=-1)            # [E, 2Ds]
    xv_e = jnp.concatenate([vx[rec], vx[send], vy[rec], vy[send],
                            vz[rec], vz[send]], axis=-1)              # [E, 6Dv]
    msg = gvp_block(xs_e, xv_e, None, emask, pw_edge, out_dtype=f32)  # [E, hid_s+3hid_v]

    # --- aggregate (global_add_pool over receiver index) ---
    agg = jax.ops.segment_sum(msg, rec, num_segments=N,
                              indices_are_sorted=True)                # [N, hid_s+3hid_v]
    agg_c = agg.astype(cd)
    a_s = agg_c[:, :hid_s]
    a_vx = agg_c[:, hid_s:hid_s + hid_v]
    a_vy = agg_c[:, hid_s + hid_v:hid_s + 2 * hid_v]
    a_vz = agg_c[:, hid_s + 2 * hid_v:]

    # --- update: concat (XLA) + node model (Pallas) + residual + node mask ---
    xs_n = jnp.concatenate([s_c, a_s], axis=-1)                       # [N, Ds+hid_s]
    xv_n = jnp.concatenate([vx, a_vx, vy, a_vy, vz, a_vz], axis=-1)   # [N, 3*(Dv+hid_v)]
    res_n = jnp.concatenate([s, v[:, :, 0], v[:, :, 1], v[:, :, 2]],
                            axis=-1).astype(io_dtype)                 # [N, Ds+3Dv]
    nmask = jnp.ones((N, 1), f32) if node_mask is None else node_mask.astype(f32)
    out = gvp_block(xs_n, xv_n, res_n, nmask, pw_node, out_dtype=io_dtype)

    out_s = out[:, :ds]
    out_v = jnp.transpose(out[:, ds:].reshape(N, 3, dv), (0, 2, 1))   # [N, Dv, 3]
    return out_s, out_v


# ----------------------------------------------------------------------------
# Parameter init + pure-JAX reference (mirrors the PyTorch math, eval mode)
# ----------------------------------------------------------------------------
def init_gvp_block_params(key, si, vi, so, vo, dtype=jnp.float32):
    h = max(vi, vo)
    ks = jax.random.split(key, 11)

    def w(k, shape, fan_in):
        return jax.random.normal(k, shape, dtype) / jnp.sqrt(float(fan_in))

    return dict(
        w_left=w(ks[0], (vi, h), vi),
        w_right=w(ks[1], (vi, h), vi),
        w_dot=w(ks[2], (h, h), h),
        b_dot=w(ks[3], (1, h), h),
        w_h=w(ks[4], (vi, h), vi),
        w_s_s=w(ks[5], (si, so), si + h),
        w_s_vd=w(ks[6], (h, so), si + h),
        b_s=w(ks[7], (1, so), si + h),
        w_v=w(ks[8], (h, vo), h),
        w_sv=w(ks[9], (so, vo), so),
        b_sv=w(ks[10], (1, vo), so),
        ln_g=jnp.ones((1, so), dtype),
        ln_b=jnp.zeros((1, so), dtype),
    )


def _ref_sigmoid(x):
    return 1.0 / (1.0 + jnp.exp(-x))


def _ref_gvp_block(p, s, v):
    # s: [R, Si], v: [R, Vi, 3]; GVPLinear(vector_gate=True) + GVPLayerNorm.
    vt = jnp.swapaxes(v, -1, -2)                         # [R, 3, Vi]
    vl = vt @ p["w_left"]
    vr = vt @ p["w_right"]
    dot = jnp.sum(vl * vr, axis=1)                       # [R, H]
    vd = dot @ p["w_dot"] + p["b_dot"][0]
    s_lin = s @ p["w_s_s"] + vd @ p["w_s_vd"] + p["b_s"][0]
    vh = vt @ p["w_h"]
    vo = jnp.swapaxes(vh @ p["w_v"], -1, -2)             # [R, Vo, 3]
    gate = _ref_sigmoid(s_lin) @ p["w_sv"] + p["b_sv"][0]
    vo = vo * _ref_sigmoid(gate)[..., None]
    s_act = jnp.maximum(s_lin, 0.0)
    vn = jnp.maximum(jnp.sum(vo * vo, -1, keepdims=True), _NORM_EPS)
    vn = jnp.sqrt(jnp.mean(vn, axis=-2, keepdims=True))
    vo = vo / vn
    mu = jnp.mean(s_act, -1, keepdims=True)
    var = jnp.mean((s_act - mu) ** 2, -1, keepdims=True)
    s_out = (s_act - mu) / jnp.sqrt(var + _LN_EPS) * p["ln_g"][0] + p["ln_b"][0]
    return s_out, vo


def ref_forward(params, s, v, edge_index, node_mask, edge_mask):
    send, rec = edge_index[0], edge_index[1]
    N = s.shape[0]
    s_cat = jnp.concatenate([s[rec], s[send]], -1)
    v_cat = jnp.concatenate([v[rec], v[send]], 1)
    s_msg, v_msg = _ref_gvp_block(params["edge"], s_cat, v_cat)
    s_msg = s_msg * edge_mask
    v_msg = v_msg * edge_mask[:, :, None]
    s_agg = jnp.zeros((N, s_msg.shape[-1]), s.dtype).at[rec].add(s_msg)
    v_agg = jnp.zeros((N,) + v_msg.shape[1:], v.dtype).at[rec].add(v_msg)
    in_s = jnp.concatenate([s, s_agg], -1)
    in_v = jnp.concatenate([v, v_agg], 1)
    s_upd, v_upd = _ref_gvp_block(params["node"], in_s, in_v)
    out_s = (s + s_upd) * node_mask
    out_v = (v + v_upd) * node_mask[:, :, None]
    return out_s, out_v


if __name__ == "__main__":
    key = jax.random.PRNGKey(0)
    # Small graph; dims chosen so in == hidden == out (the PyTorch module's
    # residual + LayerNorm shapes require this anyway).
    N, E = 8, 16
    DS, DV = 16, 4
    k = jax.random.split(key, 8)

    def bf16_round(t):
        # make inputs/weights exactly bf16-representable so the bf16-operand
        # MXU path can be compared against the f32 reference at tight tolerance
        return jax.tree_util.tree_map(
            lambda a: a.astype(jnp.bfloat16).astype(jnp.float32)
            if a.dtype == jnp.float32 else a, t)

    s = bf16_round(jax.random.normal(k[0], (N, DS), jnp.float32))
    v = bf16_round(jax.random.normal(k[1], (N, DV, 3), jnp.float32))
    send = jax.random.randint(k[2], (E,), 0, N, dtype=jnp.int32)
    rec = jax.random.randint(k[3], (E,), 0, N, dtype=jnp.int32)
    edge_index = jnp.stack([send, rec])
    node_mask = (jax.random.uniform(k[4], (N, 1)) > 0.2).astype(jnp.float32)
    edge_mask = (jax.random.uniform(k[5], (E, 1)) > 0.2).astype(jnp.float32)

    params = bf16_round(dict(
        edge=init_gvp_block_params(k[6], si=2 * DS, vi=2 * DV, so=DS, vo=DV),
        node=init_gvp_block_params(k[7], si=2 * DS, vi=2 * DV, so=DS, vo=DV),
    ))

    fwd = jax.jit(lambda s_, v_, ei_, nm_, em_:
                  gvp_mpnn_forward(params, s_, v_, ei_, nm_, em_))
    out_s, out_v = fwd(s, v, edge_index, node_mask, edge_mask)
    jax.block_until_ready((out_s, out_v))

    ref_s, ref_v = ref_forward(params, s, v, edge_index, node_mask, edge_mask)
    assert out_s.shape == ref_s.shape and out_v.shape == ref_v.shape
    err_s = float(jnp.max(jnp.abs(out_s - ref_s)))
    err_v = float(jnp.max(jnp.abs(out_v - ref_v)))
    # bf16 MXU operands + folded wh@wv deviate from the f32 reference at the
    # few-1e-3 level on unit-scale outputs.
    assert err_s < 1e-2 and err_v < 2e-2, (err_s, err_v)

    print("KERNEL_OK")
</pallas_src>

<mosaic_0001>
module attributes {stable_mosaic.version = 11 : i64} {
  func.func @_gvp_kernel(%arg0: i32, %arg1: memref<16x32xbf16, #tpu.memory_space<vmem>>, %arg2: memref<16x24xbf16, #tpu.memory_space<vmem>>, %arg3: memref<16x1xf32, #tpu.memory_space<vmem>>, %arg4: memref<24x24xbf16, #tpu.memory_space<vmem>>, %arg5: memref<24x24xbf16, #tpu.memory_space<vmem>>, %arg6: memref<24x8xbf16, #tpu.memory_space<vmem>>, %arg7: memref<1x8xf32, #tpu.memory_space<vmem>>, %arg8: memref<32x16xbf16, #tpu.memory_space<vmem>>, %arg9: memref<8x16xbf16, #tpu.memory_space<vmem>>, %arg10: memref<1x16xf32, #tpu.memory_space<vmem>>, %arg11: memref<24x12xbf16, #tpu.memory_space<vmem>>, %arg12: memref<16x4xbf16, #tpu.memory_space<vmem>>, %arg13: memref<1x4xf32, #tpu.memory_space<vmem>>, %arg14: memref<1x16xf32, #tpu.memory_space<vmem>>, %arg15: memref<1x16xf32, #tpu.memory_space<vmem>>, %arg16: memref<16x28xf32, #tpu.memory_space<vmem>>) attributes {dimension_semantics = [#tpu.dimension_semantics<parallel>], iteration_bounds = array<i64: 1>, scalar_prefetch = 0 : i64, scratch_operands = 0 : i64, tpu.core_type = #tpu.core_type<tc>, window_params = [{transform_indices = @transform_0, window_bounds = array<i64: 16, 32>}, {transform_indices = @transform_1, window_bounds = array<i64: 16, 24>}, {transform_indices = @transform_2, window_bounds = array<i64: 16, 1>}, {pipeline_mode = #tpu.pipeline_mode<synchronous>, transform_indices = @transform_3, window_bounds = array<i64: 24, 24>}, {pipeline_mode = #tpu.pipeline_mode<synchronous>, transform_indices = @transform_4, window_bounds = array<i64: 24, 24>}, {pipeline_mode = #tpu.pipeline_mode<synchronous>, transform_indices = @transform_5, window_bounds = array<i64: 24, 8>}, {pipeline_mode = #tpu.pipeline_mode<synchronous>, transform_indices = @transform_6, window_bounds = array<i64: 1, 8>}, {pipeline_mode = #tpu.pipeline_mode<synchronous>, transform_indices = @transform_7, window_bounds = array<i64: 32, 16>}, {pipeline_mode = #tpu.pipeline_mode<synchronous>, transform_indices = @transform_8, window_bounds = array<i64: 8, 16>}, {pipeline_mode = #tpu.pipeline_mode<synchronous>, transform_indices = @transform_9, window_bounds = array<i64: 1, 16>}, {pipeline_mode = #tpu.pipeline_mode<synchronous>, transform_indices = @transform_10, window_bounds = array<i64: 24, 12>}, {pipeline_mode = #tpu.pipeline_mode<synchronous>, transform_indices = @transform_11, window_bounds = array<i64: 16, 4>}, {pipeline_mode = #tpu.pipeline_mode<synchronous>, transform_indices = @transform_12, window_bounds = array<i64: 1, 4>}, {pipeline_mode = #tpu.pipeline_mode<synchronous>, transform_indices = @transform_13, window_bounds = array<i64: 1, 16>}, {pipeline_mode = #tpu.pipeline_mode<synchronous>, transform_indices = @transform_14, window_bounds = array<i64: 1, 16>}, {transform_indices = @transform_15, window_bounds = array<i64: 16, 28>}]} {
    %c0 = arith.constant 0 : index
    %c0_0 = arith.constant 0 : index
    %0 = vector.load %arg1[%c0, %c0_0] : memref<16x32xbf16, #tpu.memory_space<vmem>>, vector<16x32xbf16>
    %c0_1 = arith.constant 0 : index
    %c0_2 = arith.constant 0 : index
    %1 = vector.load %arg2[%c0_1, %c0_2] : memref<16x24xbf16, #tpu.memory_space<vmem>>, vector<16x24xbf16>
    %c0_3 = arith.constant 0 : index
    %c0_4 = arith.constant 0 : index
    %2 = vector.load %arg4[%c0_3, %c0_4] : memref<24x24xbf16, #tpu.memory_space<vmem>>, vector<24x24xbf16>
    %cst = arith.constant dense<0.000000e+00> : vector<16x24xf32>
    %3 = tpu.matmul %1, %2, %cst {dimension_numbers = #tpu.dot_dimension_numbers<[1], [0], [0], [1], [0, 0, 1, 1], [], []>} : vector<16x24xbf16>, vector<24x24xbf16>, vector<16x24xf32> -> vector<16x24xf32>
    %c0_5 = arith.constant 0 : index
    %c0_6 = arith.constant 0 : index
    %4 = vector.load %arg5[%c0_5, %c0_6] : memref<24x24xbf16, #tpu.memory_space<vmem>>, vector<24x24xbf16>
    %cst_7 = arith.constant dense<0.000000e+00> : vector<16x24xf32>
    %5 = tpu.matmul %1, %4, %cst_7 {dimension_numbers = #tpu.dot_dimension_numbers<[1], [0], [0], [1], [0, 0, 1, 1], [], []>} : vector<16x24xbf16>, vector<24x24xbf16>, vector<16x24xf32> -> vector<16x24xf32>
    %6 = arith.mulf %3, %5 : vector<16x24xf32>
    %7 = arith.truncf %6 : vector<16x24xf32> to vector<16x24xbf16>
    %c0_8 = arith.constant 0 : index
    %c0_9 = arith.constant 0 : index
    %8 = vector.load %arg6[%c0_8, %c0_9] : memref<24x8xbf16, #tpu.memory_space<vmem>>, vector<24x8xbf16>
    %cst_10 = arith.constant dense<0.000000e+00> : vector<16x8xf32>
    %9 = tpu.matmul %7, %8, %cst_10 {dimension_numbers = #tpu.dot_dimension_numbers<[1], [0], [0], [1], [0, 0, 1, 1], [], []>} : vector<16x24xbf16>, vector<24x8xbf16>, vector<16x8xf32> -> vector<16x8xf32>
    %c0_11 = arith.constant 0 : index
    %c0_12 = arith.constant 0 : index
    %10 = vector.load %arg7[%c0_11, %c0_12] : memref<1x8xf32, #tpu.memory_space<vmem>>, vector<1x8xf32>
    %11 = vector.broadcast %10 : vector<1x8xf32> to vector<16x8xf32>
    %12 = arith.addf %9, %11 : vector<16x8xf32>
    %c0_13 = arith.constant 0 : index
    %c0_14 = arith.constant 0 : index
    %13 = vector.load %arg8[%c0_13, %c0_14] : memref<32x16xbf16, #tpu.memory_space<vmem>>, vector<32x16xbf16>
    %cst_15 = arith.constant dense<0.000000e+00> : vector<16x16xf32>
    %14 = tpu.matmul %0, %13, %cst_15 {dimension_numbers = #tpu.dot_dimension_numbers<[1], [0], [0], [1], [0, 0, 1, 1], [], []>} : vector<16x32xbf16>, vector<32x16xbf16>, vector<16x16xf32> -> vector<16x16xf32>
    %15 = arith.truncf %12 : vector<16x8xf32> to vector<16x8xbf16>
    %c0_16 = arith.constant 0 : index
    %c0_17 = arith.constant 0 : index
    %16 = vector.load %arg9[%c0_16, %c0_17] : memref<8x16xbf16, #tpu.memory_space<vmem>>, vector<8x16xbf16>
    %cst_18 = arith.constant dense<0.000000e+00> : vector<16x16xf32>
    %17 = tpu.matmul %15, %16, %cst_18 {dimension_numbers = #tpu.dot_dimension_numbers<[1], [0], [0], [1], [0, 0, 1, 1], [], []>} : vector<16x8xbf16>, vector<8x16xbf16>, vector<16x16xf32> -> vector<16x16xf32>
    %18 = arith.addf %14, %17 : vector<16x16xf32>
    %c0_19 = arith.constant 0 : index
    %c0_20 = arith.constant 0 : index
    %19 = vector.load %arg10[%c0_19, %c0_20] : memref<1x16xf32, #tpu.memory_space<vmem>>, vector<1x16xf32>
    %20 = vector.broadcast %19 : vector<1x16xf32> to vector<16x16xf32>
    %21 = arith.addf %18, %20 : vector<16x16xf32>
    %cst_21 = arith.constant 0.000000e+00 : f32
    %22 = vector.broadcast %cst_21 : f32 to vector<16x16xf32>
    %23 = arith.subf %22, %21 : vector<16x16xf32>
    %24 = math.exp %23 : vector<16x16xf32>
    %cst_22 = arith.constant 1.000000e+00 : f32
    %25 = vector.broadcast %cst_22 : f32 to vector<16x16xf32>
    %26 = arith.addf %25, %24 : vector<16x16xf32>
    %cst_23 = arith.constant 1.000000e+00 : f32
    %27 = vector.broadcast %cst_23 : f32 to vector<16x16xf32>
    %28 = arith.divf %27, %26 : vector<16x16xf32>
    %29 = arith.truncf %28 : vector<16x16xf32> to vector<16x16xbf16>
    %c0_24 = arith.constant 0 : index
    %c0_25 = arith.constant 0 : index
    %30 = vector.load %arg12[%c0_24, %c0_25] : memref<16x4xbf16, #tpu.memory_space<vmem>>, vector<16x4xbf16>
    %cst_26 = arith.constant dense<0.000000e+00> : vector<16x4xf32>
    %31 = tpu.matmul %29, %30, %cst_26 {dimension_numbers = #tpu.dot_dimension_numbers<[1], [0], [0], [1], [0, 0, 1, 1], [], []>} : vector<16x16xbf16>, vector<16x4xbf16>, vector<16x4xf32> -> vector<16x4xf32>
    %c0_27 = arith.constant 0 : index
    %c0_28 = arith.constant 0 : index
    %32 = vector.load %arg13[%c0_27, %c0_28] : memref<1x4xf32, #tpu.memory_space<vmem>>, vector<1x4xf32>
    %33 = vector.broadcast %32 : vector<1x4xf32> to vector<16x4xf32>
    %34 = arith.addf %31, %33 : vector<16x4xf32>
    %cst_29 = arith.constant 0.000000e+00 : f32
    %35 = vector.broadcast %cst_29 : f32 to vector<16x4xf32>
    %36 = arith.subf %35, %34 : vector<16x4xf32>
    %37 = math.exp %36 : vector<16x4xf32>
    %cst_30 = arith.constant 1.000000e+00 : f32
    %38 = vector.broadcast %cst_30 : f32 to vector<16x4xf32>
    %39 = arith.addf %38, %37 : vector<16x4xf32>
    %cst_31 = arith.constant 1.000000e+00 : f32
    %40 = vector.broadcast %cst_31 : f32 to vector<16x4xf32>
    %41 = arith.divf %40, %39 : vector<16x4xf32>
    %c0_32 = arith.constant 0 : index
    %c0_33 = arith.constant 0 : index
    %42 = vector.load %arg11[%c0_32, %c0_33] : memref<24x12xbf16, #tpu.memory_space<vmem>>, vector<24x12xbf16>
    %cst_34 = arith.constant dense<0.000000e+00> : vector<16x12xf32>
    %43 = tpu.matmul %1, %42, %cst_34 {dimension_numbers = #tpu.dot_dimension_numbers<[1], [0], [0], [1], [0, 0, 1, 1], [], []>} : vector<16x24xbf16>, vector<24x12xbf16>, vector<16x12xf32> -> vector<16x12xf32>
    %44 = tpu.concatenate %41, %41, %41 in 1 : vector<16x4xf32>, vector<16x4xf32>, vector<16x4xf32> -> vector<16x12xf32>
    %45 = arith.mulf %43, %44 : vector<16x12xf32>
    %cst_35 = arith.constant 0.000000e+00 : f32
    %46 = vector.broadcast %cst_35 : f32 to vector<16x16xf32>
    %47 = arith.maximumf %21, %46 : vector<16x16xf32>
    %48 = vector.extract_strided_slice %45 {offsets = [0, 0], sizes = [16, 4], strides = [1, 1]} : vector<16x12xf32> to vector<16x4xf32>
    %49 = vector.extract_strided_slice %45 {offsets = [0, 0], sizes = [16, 4], strides = [1, 1]} : vector<16x12xf32> to vector<16x4xf32>
    %50 = arith.mulf %48, %49 : vector<16x4xf32>
    %51 = vector.extract_strided_slice %45 {offsets = [0, 4], sizes = [16, 4], strides = [1, 1]} : vector<16x12xf32> to vector<16x4xf32>
    %52 = vector.extract_strided_slice %45 {offsets = [0, 4], sizes = [16, 4], strides = [1, 1]} : vector<16x12xf32> to vector<16x4xf32>
    %53 = arith.mulf %51, %52 : vector<16x4xf32>
    %54 = arith.addf %50, %53 : vector<16x4xf32>
    %55 = vector.extract_strided_slice %45 {offsets = [0, 8], sizes = [16, 4], strides = [1, 1]} : vector<16x12xf32> to vector<16x4xf32>
    %56 = vector.extract_strided_slice %45 {offsets = [0, 8], sizes = [16, 4], strides = [1, 1]} : vector<16x12xf32> to vector<16x4xf32>
    %57 = arith.mulf %55, %56 : vector<16x4xf32>
    %58 = arith.addf %54, %57 : vector<16x4xf32>
    %cst_36 = arith.constant 9.99999993E-9 : f32
    %59 = vector.broadcast %cst_36 : f32 to vector<16x4xf32>
    %60 = arith.maximumf %58, %59 : vector<16x4xf32>
    %cst_37 = arith.constant dense<0.000000e+00> : vector<16xf32>
    %61 = vector.multi_reduction <add>, %60, %cst_37 [1] : vector<16x4xf32> to vector<16xf32>
    %62 = vector.shape_cast %61 : vector<16xf32> to vector<16x1xf32>
    %cst_38 = arith.constant 4.000000e+00 : f32
    %63 = vector.broadcast %cst_38 : f32 to vector<16x1xf32>
    %64 = arith.divf %62, %63 : vector<16x1xf32>
    %65 = math.rsqrt %64 : vector<16x1xf32>
    %cst_39 = arith.constant dense<0.000000e+00> : vector<16xf32>
    %66 = vector.multi_reduction <add>, %47, %cst_39 [1] : vector<16x16xf32> to vector<16xf32>
    %67 = vector.shape_cast %66 : vector<16xf32> to vector<16x1xf32>
    %cst_40 = arith.constant 1.600000e+01 : f32
    %68 = vector.broadcast %cst_40 : f32 to vector<16x1xf32>
    %69 = arith.divf %67, %68 : vector<16x1xf32>
    %70 = vector.broadcast %69 : vector<16x1xf32> to vector<16x16xf32>
    %71 = arith.subf %47, %70 : vector<16x16xf32>
    %72 = arith.mulf %71, %71 : vector<16x16xf32>
    %cst_41 = arith.constant dense<0.000000e+00> : vector<16xf32>
    %73 = vector.multi_reduction <add>, %72, %cst_41 [1] : vector<16x16xf32> to vector<16xf32>
    %74 = vector.shape_cast %73 : vector<16xf32> to vector<16x1xf32>
    %cst_42 = arith.constant 1.600000e+01 : f32
    %75 = vector.broadcast %cst_42 : f32 to vector<16x1xf32>
    %76 = arith.divf %74, %75 : vector<16x1xf32>
    %77 = vector.broadcast %69 : vector<16x1xf32> to vector<16x16xf32>
    %78 = arith.subf %47, %77 : vector<16x16xf32>
    %cst_43 = arith.constant 9.99999974E-6 : f32
    %79 = vector.broadcast %cst_43 : f32 to vector<16x1xf32>
    %80 = arith.addf %76, %79 : vector<16x1xf32>
    %81 = math.rsqrt %80 : vector<16x1xf32>
    %82 = vector.broadcast %81 : vector<16x1xf32> to vector<16x16xf32>
    %83 = arith.mulf %78, %82 : vector<16x16xf32>
    %c0_44 = arith.constant 0 : index
    %c0_45 = arith.constant 0 : index
    %84 = vector.load %arg14[%c0_44, %c0_45] : memref<1x16xf32, #tpu.memory_space<vmem>>, vector<1x16xf32>
    %85 = vector.broadcast %84 : vector<1x16xf32> to vector<16x16xf32>
    %86 = arith.mulf %83, %85 : vector<16x16xf32>
    %c0_46 = arith.constant 0 : index
    %c0_47 = arith.constant 0 : index
    %87 = vector.load %arg15[%c0_46, %c0_47] : memref<1x16xf32, #tpu.memory_space<vmem>>, vector<1x16xf32>
    %88 = vector.broadcast %87 : vector<1x16xf32> to vector<16x16xf32>
    %89 = arith.addf %86, %88 : vector<16x16xf32>
    %90 = vector.broadcast %65 : vector<16x1xf32> to vector<16x12xf32>
    %91 = arith.mulf %45, %90 : vector<16x12xf32>
    %92 = tpu.concatenate %89, %91 in 1 : vector<16x16xf32>, vector<16x12xf32> -> vector<16x28xf32>
    %c0_48 = arith.constant 0 : index
    %c0_49 = arith.constant 0 : index
    %93 = vector.load %arg3[%c0_48, %c0_49] : memref<16x1xf32, #tpu.memory_space<vmem>>, vector<16x1xf32>
    %94 = vector.broadcast %93 : vector<16x1xf32> to vector<16x28xf32>
    %95 = arith.mulf %92, %94 : vector<16x28xf32>
    %c0_50 = arith.constant 0 : index
    %c0_51 = arith.constant 0 : index
    %96 = vector.load %arg16[%c0_50, %c0_51] : memref<16x28xf32, #tpu.memory_space<vmem>>, vector<16x28xf32>
    tpu.vector_store %arg16[%c0_50, %c0_51], %95 {strides = array<i32>} : memref<16x28xf32, #tpu.memory_space<vmem>>, vector<16x28xf32>,
    return
  }
  func.func @transform_0(%arg0: i32) -> (i32, i32) {
    %c0_i32 = arith.constant 0 : i32
    %c0_i32_0 = arith.constant 0 : i32
    return %arg0, %c0_i32 : i32, i32
  }
  func.func @transform_1(%arg0: i32) -> (i32, i32) {
    %c0_i32 = arith.constant 0 : i32
    %c0_i32_0 = arith.constant 0 : i32
    return %arg0, %c0_i32 : i32, i32
  }
  func.func @transform_2(%arg0: i32) -> (i32, i32) {
    %c0_i32 = arith.constant 0 : i32
    %c0_i32_0 = arith.constant 0 : i32
    return %arg0, %c0_i32 : i32, i32
  }
  func.func @transform_3(%arg0: i32) -> (i32, i32) {
    %c0_i32 = arith.constant 0 : i32
    %c0_i32_0 = arith.constant 0 : i32
    %c0_i32_1 = arith.constant 0 : i32
    return %c0_i32, %c0_i32_0 : i32, i32
  }
  func.func @transform_4(%arg0: i32) -> (i32, i32) {
    %c0_i32 = arith.constant 0 : i32
    %c0_i32_0 = arith.constant 0 : i32
    %c0_i32_1 = arith.constant 0 : i32
    return %c0_i32, %c0_i32_0 : i32, i32
  }
  func.func @transform_5(%arg0: i32) -> (i32, i32) {
    %c0_i32 = arith.constant 0 : i32
    %c0_i32_0 = arith.constant 0 : i32
    %c0_i32_1 = arith.constant 0 : i32
    return %c0_i32, %c0_i32_0 : i32, i32
  }
  func.func @transform_6(%arg0: i32) -> (i32, i32) {
    %c0_i32 = arith.constant 0 : i32
    %c0_i32_0 = arith.constant 0 : i32
    %c0_i32_1 = arith.constant 0 : i32
    return %c0_i32, %c0_i32_0 : i32, i32
  }
  func.func @transform_7(%arg0: i32) -> (i32, i32) {
    %c0_i32 = arith.constant 0 : i32
    %c0_i32_0 = arith.constant 0 : i32
    %c0_i32_1 = arith.constant 0 : i32
    return %c0_i32, %c0_i32_0 : i32, i32
  }
  func.func @transform_8(%arg0: i32) -> (i32, i32) {
    %c0_i32 = arith.constant 0 : i32
    %c0_i32_0 = arith.constant 0 : i32
    %c0_i32_1 = arith.constant 0 : i32
    return %c0_i32, %c0_i32_0 : i32, i32
  }
  func.func @transform_9(%arg0: i32) -> (i32, i32) {
    %c0_i32 = arith.constant 0 : i32
    %c0_i32_0 = arith.constant 0 : i32
    %c0_i32_1 = arith.constant 0 : i32
    return %c0_i32, %c0_i32_0 : i32, i32
  }
  func.func @transform_10(%arg0: i32) -> (i32, i32) {
    %c0_i32 = arith.constant 0 : i32
    %c0_i32_0 = arith.constant 0 : i32
    %c0_i32_1 = arith.constant 0 : i32
    return %c0_i32, %c0_i32_0 : i32, i32
  }
  func.func @transform_11(%arg0: i32) -> (i32, i32) {
    %c0_i32 = arith.constant 0 : i32
    %c0_i32_0 = arith.constant 0 : i32
    %c0_i32_1 = arith.constant 0 : i32
    return %c0_i32, %c0_i32_0 : i32, i32
  }
  func.func @transform_12(%arg0: i32) -> (i32, i32) {
    %c0_i32 = arith.constant 0 : i32
    %c0_i32_0 = arith.constant 0 : i32
    %c0_i32_1 = arith.constant 0 : i32
    return %c0_i32, %c0_i32_0 : i32, i32
  }
  func.func @transform_13(%arg0: i32) -> (i32, i32) {
    %c0_i32 = arith.constant 0 : i32
    %c0_i32_0 = arith.constant 0 : i32
    %c0_i32_1 = arith.constant 0 : i32
    return %c0_i32, %c0_i32_0 : i32, i32
  }
  func.func @transform_14(%arg0: i32) -> (i32, i32) {
    %c0_i32 = arith.constant 0 : i32
    %c0_i32_0 = arith.constant 0 : i32
    %c0_i32_1 = arith.constant 0 : i32
    return %c0_i32, %c0_i32_0 : i32, i32
  }
  func.func @transform_15(%arg0: i32) -> (i32, i32) {
    %c0_i32 = arith.constant 0 : i32
    %c0_i32_0 = arith.constant 0 : i32
    return %arg0, %c0_i32 : i32, i32
  }
}

module attributes {stable_mosaic.version = 11 : i64} {
  func.func @_gvp_kernel(%arg0: i32, %arg1: memref<16x32xbf16, #tpu.memory_space<vmem>>, %arg2: memref<16x24xbf16, #tpu.memory_space<vmem>>, %arg3: memref<16x28xf32, #tpu.memory_space<vmem>>, %arg4: memref<16x1xf32, #tpu.memory_space<vmem>>, %arg5: memref<24x24xbf16, #tpu.memory_space<vmem>>, %arg6: memref<24x24xbf16, #tpu.memory_space<vmem>>, %arg7: memref<24x8xbf16, #tpu.memory_space<vmem>>, %arg8: memref<1x8xf32, #tpu.memory_space<vmem>>, %arg9: memref<32x16xbf16, #tpu.memory_space<vmem>>, %arg10: memref<8x16xbf16, #tpu.memory_space<vmem>>, %arg11: memref<1x16xf32, #tpu.memory_space<vmem>>, %arg12: memref<24x12xbf16, #tpu.memory_space<vmem>>, %arg13: memref<16x4xbf16, #tpu.memory_space<vmem>>, %arg14: memref<1x4xf32, #tpu.memory_space<vmem>>, %arg15: memref<1x16xf32, #tpu.memory_space<vmem>>, %arg16: memref<1x16xf32, #tpu.memory_space<vmem>>, %arg17: memref<16x28xf32, #tpu.memory_space<vmem>>) attributes {dimension_semantics = [#tpu.dimension_semantics<parallel>], iteration_bounds = array<i64: 1>, scalar_prefetch = 0 : i64, scratch_operands = 0 : i64, tpu.core_type = #tpu.core_type<tc>, window_params = [{transform_indices = @transform_0, window_bounds = array<i64: 16, 32>}, {transform_indices = @transform_1, window_bounds = array<i64: 16, 24>}, {transform_indices = @transform_2, window_bounds = array<i64: 16, 28>}, {transform_indices = @transform_3, window_bounds = array<i64: 16, 1>}, {pipeline_mode = #tpu.pipeline_mode<synchronous>, transform_indices = @transform_4, window_bounds = array<i64: 24, 24>}, {pipeline_mode = #tpu.pipeline_mode<synchronous>, transform_indices = @transform_5, window_bounds = array<i64: 24, 24>}, {pipeline_mode = #tpu.pipeline_mode<synchronous>, transform_indices = @transform_6, window_bounds = array<i64: 24, 8>}, {pipeline_mode = #tpu.pipeline_mode<synchronous>, transform_indices = @transform_7, window_bounds = array<i64: 1, 8>}, {pipeline_mode = #tpu.pipeline_mode<synchronous>, transform_indices = @transform_8, window_bounds = array<i64: 32, 16>}, {pipeline_mode = #tpu.pipeline_mode<synchronous>, transform_indices = @transform_9, window_bounds = array<i64: 8, 16>}, {pipeline_mode = #tpu.pipeline_mode<synchronous>, transform_indices = @transform_10, window_bounds = array<i64: 1, 16>}, {pipeline_mode = #tpu.pipeline_mode<synchronous>, transform_indices = @transform_11, window_bounds = array<i64: 24, 12>}, {pipeline_mode = #tpu.pipeline_mode<synchronous>, transform_indices = @transform_12, window_bounds = array<i64: 16, 4>}, {pipeline_mode = #tpu.pipeline_mode<synchronous>, transform_indices = @transform_13, window_bounds = array<i64: 1, 4>}, {pipeline_mode = #tpu.pipeline_mode<synchronous>, transform_indices = @transform_14, window_bounds = array<i64: 1, 16>}, {pipeline_mode = #tpu.pipeline_mode<synchronous>, transform_indices = @transform_15, window_bounds = array<i64: 1, 16>}, {transform_indices = @transform_16, window_bounds = array<i64: 16, 28>}]} {
    %c0 = arith.constant 0 : index
    %c0_0 = arith.constant 0 : index
    %0 = vector.load %arg1[%c0, %c0_0] : memref<16x32xbf16, #tpu.memory_space<vmem>>, vector<16x32xbf16>
    %c0_1 = arith.constant 0 : index
    %c0_2 = arith.constant 0 : index
    %1 = vector.load %arg2[%c0_1, %c0_2] : memref<16x24xbf16, #tpu.memory_space<vmem>>, vector<16x24xbf16>
    %c0_3 = arith.constant 0 : index
    %c0_4 = arith.constant 0 : index
    %2 = vector.load %arg5[%c0_3, %c0_4] : memref<24x24xbf16, #tpu.memory_space<vmem>>, vector<24x24xbf16>
    %cst = arith.constant dense<0.000000e+00> : vector<16x24xf32>
    %3 = tpu.matmul %1, %2, %cst {dimension_numbers = #tpu.dot_dimension_numbers<[1], [0], [0], [1], [0, 0, 1, 1], [], []>} : vector<16x24xbf16>, vector<24x24xbf16>, vector<16x24xf32> -> vector<16x24xf32>
    %c0_5 = arith.constant 0 : index
    %c0_6 = arith.constant 0 : index
    %4 = vector.load %arg6[%c0_5, %c0_6] : memref<24x24xbf16, #tpu.memory_space<vmem>>, vector<24x24xbf16>
    %cst_7 = arith.constant dense<0.000000e+00> : vector<16x24xf32>
    %5 = tpu.matmul %1, %4, %cst_7 {dimension_numbers = #tpu.dot_dimension_numbers<[1], [0], [0], [1], [0, 0, 1, 1], [], []>} : vector<16x24xbf16>, vector<24x24xbf16>, vector<16x24xf32> -> vector<16x24xf32>
    %6 = arith.mulf %3, %5 : vector<16x24xf32>
    %7 = arith.truncf %6 : vector<16x24xf32> to vector<16x24xbf16>
    %c0_8 = arith.constant 0 : index
    %c0_9 = arith.constant 0 : index
    %8 = vector.load %arg7[%c0_8, %c0_9] : memref<24x8xbf16, #tpu.memory_space<vmem>>, vector<24x8xbf16>
    %cst_10 = arith.constant dense<0.000000e+00> : vector<16x8xf32>
    %9 = tpu.matmul %7, %8, %cst_10 {dimension_numbers = #tpu.dot_dimension_numbers<[1], [0], [0], [1], [0, 0, 1, 1], [], []>} : vector<16x24xbf16>, vector<24x8xbf16>, vector<16x8xf32> -> vector<16x8xf32>
    %c0_11 = arith.constant 0 : index
    %c0_12 = arith.constant 0 : index
    %10 = vector.load %arg8[%c0_11, %c0_12] : memref<1x8xf32, #tpu.memory_space<vmem>>, vector<1x8xf32>
    %11 = vector.broadcast %10 : vector<1x8xf32> to vector<16x8xf32>
    %12 = arith.addf %9, %11 : vector<16x8xf32>
    %c0_13 = arith.constant 0 : index
    %c0_14 = arith.constant 0 : index
    %13 = vector.load %arg9[%c0_13, %c0_14] : memref<32x16xbf16, #tpu.memory_space<vmem>>, vector<32x16xbf16>
    %cst_15 = arith.constant dense<0.000000e+00> : vector<16x16xf32>
    %14 = tpu.matmul %0, %13, %cst_15 {dimension_numbers = #tpu.dot_dimension_numbers<[1], [0], [0], [1], [0, 0, 1, 1], [], []>} : vector<16x32xbf16>, vector<32x16xbf16>, vector<16x16xf32> -> vector<16x16xf32>
    %15 = arith.truncf %12 : vector<16x8xf32> to vector<16x8xbf16>
    %c0_16 = arith.constant 0 : index
    %c0_17 = arith.constant 0 : index
    %16 = vector.load %arg10[%c0_16, %c0_17] : memref<8x16xbf16, #tpu.memory_space<vmem>>, vector<8x16xbf16>
    %cst_18 = arith.constant dense<0.000000e+00> : vector<16x16xf32>
    %17 = tpu.matmul %15, %16, %cst_18 {dimension_numbers = #tpu.dot_dimension_numbers<[1], [0], [0], [1], [0, 0, 1, 1], [], []>} : vector<16x8xbf16>, vector<8x16xbf16>, vector<16x16xf32> -> vector<16x16xf32>
    %18 = arith.addf %14, %17 : vector<16x16xf32>
    %c0_19 = arith.constant 0 : index
    %c0_20 = arith.constant 0 : index
    %19 = vector.load %arg11[%c0_19, %c0_20] : memref<1x16xf32, #tpu.memory_space<vmem>>, vector<1x16xf32>
    %20 = vector.broadcast %19 : vector<1x16xf32> to vector<16x16xf32>
    %21 = arith.addf %18, %20 : vector<16x16xf32>
    %cst_21 = arith.constant 0.000000e+00 : f32
    %22 = vector.broadcast %cst_21 : f32 to vector<16x16xf32>
    %23 = arith.subf %22, %21 : vector<16x16xf32>
    %24 = math.exp %23 : vector<16x16xf32>
    %cst_22 = arith.constant 1.000000e+00 : f32
    %25 = vector.broadcast %cst_22 : f32 to vector<16x16xf32>
    %26 = arith.addf %25, %24 : vector<16x16xf32>
    %cst_23 = arith.constant 1.000000e+00 : f32
    %27 = vector.broadcast %cst_23 : f32 to vector<16x16xf32>
    %28 = arith.divf %27, %26 : vector<16x16xf32>
    %29 = arith.truncf %28 : vector<16x16xf32> to vector<16x16xbf16>
    %c0_24 = arith.constant 0 : index
    %c0_25 = arith.constant 0 : index
    %30 = vector.load %arg13[%c0_24, %c0_25] : memref<16x4xbf16, #tpu.memory_space<vmem>>, vector<16x4xbf16>
    %cst_26 = arith.constant dense<0.000000e+00> : vector<16x4xf32>
    %31 = tpu.matmul %29, %30, %cst_26 {dimension_numbers = #tpu.dot_dimension_numbers<[1], [0], [0], [1], [0, 0, 1, 1], [], []>} : vector<16x16xbf16>, vector<16x4xbf16>, vector<16x4xf32> -> vector<16x4xf32>
    %c0_27 = arith.constant 0 : index
    %c0_28 = arith.constant 0 : index
    %32 = vector.load %arg14[%c0_27, %c0_28] : memref<1x4xf32, #tpu.memory_space<vmem>>, vector<1x4xf32>
    %33 = vector.broadcast %32 : vector<1x4xf32> to vector<16x4xf32>
    %34 = arith.addf %31, %33 : vector<16x4xf32>
    %cst_29 = arith.constant 0.000000e+00 : f32
    %35 = vector.broadcast %cst_29 : f32 to vector<16x4xf32>
    %36 = arith.subf %35, %34 : vector<16x4xf32>
    %37 = math.exp %36 : vector<16x4xf32>
    %cst_30 = arith.constant 1.000000e+00 : f32
    %38 = vector.broadcast %cst_30 : f32 to vector<16x4xf32>
    %39 = arith.addf %38, %37 : vector<16x4xf32>
    %cst_31 = arith.constant 1.000000e+00 : f32
    %40 = vector.broadcast %cst_31 : f32 to vector<16x4xf32>
    %41 = arith.divf %40, %39 : vector<16x4xf32>
    %c0_32 = arith.constant 0 : index
    %c0_33 = arith.constant 0 : index
    %42 = vector.load %arg12[%c0_32, %c0_33] : memref<24x12xbf16, #tpu.memory_space<vmem>>, vector<24x12xbf16>
    %cst_34 = arith.constant dense<0.000000e+00> : vector<16x12xf32>
    %43 = tpu.matmul %1, %42, %cst_34 {dimension_numbers = #tpu.dot_dimension_numbers<[1], [0], [0], [1], [0, 0, 1, 1], [], []>} : vector<16x24xbf16>, vector<24x12xbf16>, vector<16x12xf32> -> vector<16x12xf32>
    %44 = tpu.concatenate %41, %41, %41 in 1 : vector<16x4xf32>, vector<16x4xf32>, vector<16x4xf32> -> vector<16x12xf32>
    %45 = arith.mulf %43, %44 : vector<16x12xf32>
    %cst_35 = arith.constant 0.000000e+00 : f32
    %46 = vector.broadcast %cst_35 : f32 to vector<16x16xf32>
    %47 = arith.maximumf %21, %46 : vector<16x16xf32>
    %48 = vector.extract_strided_slice %45 {offsets = [0, 0], sizes = [16, 4], strides = [1, 1]} : vector<16x12xf32> to vector<16x4xf32>
    %49 = vector.extract_strided_slice %45 {offsets = [0, 0], sizes = [16, 4], strides = [1, 1]} : vector<16x12xf32> to vector<16x4xf32>
    %50 = arith.mulf %48, %49 : vector<16x4xf32>
    %51 = vector.extract_strided_slice %45 {offsets = [0, 4], sizes = [16, 4], strides = [1, 1]} : vector<16x12xf32> to vector<16x4xf32>
    %52 = vector.extract_strided_slice %45 {offsets = [0, 4], sizes = [16, 4], strides = [1, 1]} : vector<16x12xf32> to vector<16x4xf32>
    %53 = arith.mulf %51, %52 : vector<16x4xf32>
    %54 = arith.addf %50, %53 : vector<16x4xf32>
    %55 = vector.extract_strided_slice %45 {offsets = [0, 8], sizes = [16, 4], strides = [1, 1]} : vector<16x12xf32> to vector<16x4xf32>
    %56 = vector.extract_strided_slice %45 {offsets = [0, 8], sizes = [16, 4], strides = [1, 1]} : vector<16x12xf32> to vector<16x4xf32>
    %57 = arith.mulf %55, %56 : vector<16x4xf32>
    %58 = arith.addf %54, %57 : vector<16x4xf32>
    %cst_36 = arith.constant 9.99999993E-9 : f32
    %59 = vector.broadcast %cst_36 : f32 to vector<16x4xf32>
    %60 = arith.maximumf %58, %59 : vector<16x4xf32>
    %cst_37 = arith.constant dense<0.000000e+00> : vector<16xf32>
    %61 = vector.multi_reduction <add>, %60, %cst_37 [1] : vector<16x4xf32> to vector<16xf32>
    %62 = vector.shape_cast %61 : vector<16xf32> to vector<16x1xf32>
    %cst_38 = arith.constant 4.000000e+00 : f32
    %63 = vector.broadcast %cst_38 : f32 to vector<16x1xf32>
    %64 = arith.divf %62, %63 : vector<16x1xf32>
    %65 = math.rsqrt %64 : vector<16x1xf32>
    %cst_39 = arith.constant dense<0.000000e+00> : vector<16xf32>
    %66 = vector.multi_reduction <add>, %47, %cst_39 [1] : vector<16x16xf32> to vector<16xf32>
    %67 = vector.shape_cast %66 : vector<16xf32> to vector<16x1xf32>
    %cst_40 = arith.constant 1.600000e+01 : f32
    %68 = vector.broadcast %cst_40 : f32 to vector<16x1xf32>
    %69 = arith.divf %67, %68 : vector<16x1xf32>
    %70 = vector.broadcast %69 : vector<16x1xf32> to vector<16x16xf32>
    %71 = arith.subf %47, %70 : vector<16x16xf32>
    %72 = arith.mulf %71, %71 : vector<16x16xf32>
    %cst_41 = arith.constant dense<0.000000e+00> : vector<16xf32>
    %73 = vector.multi_reduction <add>, %72, %cst_41 [1] : vector<16x16xf32> to vector<16xf32>
    %74 = vector.shape_cast %73 : vector<16xf32> to vector<16x1xf32>
    %cst_42 = arith.constant 1.600000e+01 : f32
    %75 = vector.broadcast %cst_42 : f32 to vector<16x1xf32>
    %76 = arith.divf %74, %75 : vector<16x1xf32>
    %77 = vector.broadcast %69 : vector<16x1xf32> to vector<16x16xf32>
    %78 = arith.subf %47, %77 : vector<16x16xf32>
    %cst_43 = arith.constant 9.99999974E-6 : f32
    %79 = vector.broadcast %cst_43 : f32 to vector<16x1xf32>
    %80 = arith.addf %76, %79 : vector<16x1xf32>
    %81 = math.rsqrt %80 : vector<16x1xf32>
    %82 = vector.broadcast %81 : vector<16x1xf32> to vector<16x16xf32>
    %83 = arith.mulf %78, %82 : vector<16x16xf32>
    %c0_44 = arith.constant 0 : index
    %c0_45 = arith.constant 0 : index
    %84 = vector.load %arg15[%c0_44, %c0_45] : memref<1x16xf32, #tpu.memory_space<vmem>>, vector<1x16xf32>
    %85 = vector.broadcast %84 : vector<1x16xf32> to vector<16x16xf32>
    %86 = arith.mulf %83, %85 : vector<16x16xf32>
    %c0_46 = arith.constant 0 : index
    %c0_47 = arith.constant 0 : index
    %87 = vector.load %arg16[%c0_46, %c0_47] : memref<1x16xf32, #tpu.memory_space<vmem>>, vector<1x16xf32>
    %88 = vector.broadcast %87 : vector<1x16xf32> to vector<16x16xf32>
    %89 = arith.addf %86, %88 : vector<16x16xf32>
    %90 = vector.broadcast %65 : vector<16x1xf32> to vector<16x12xf32>
    %91 = arith.mulf %45, %90 : vector<16x12xf32>
    %92 = tpu.concatenate %89, %91 in 1 : vector<16x16xf32>, vector<16x12xf32> -> vector<16x28xf32>
    %c0_48 = arith.constant 0 : index
    %c0_49 = arith.constant 0 : index
    %93 = vector.load %arg3[%c0_48, %c0_49] : memref<16x28xf32, #tpu.memory_space<vmem>>, vector<16x28xf32>
    %94 = arith.addf %93, %92 : vector<16x28xf32>
    %c0_50 = arith.constant 0 : index
    %c0_51 = arith.constant 0 : index
    %95 = vector.load %arg4[%c0_50, %c0_51] : memref<16x1xf32, #tpu.memory_space<vmem>>, vector<16x1xf32>
    %96 = vector.broadcast %95 : vector<16x1xf32> to vector<16x28xf32>
    %97 = arith.mulf %94, %96 : vector<16x28xf32>
    %c0_52 = arith.constant 0 : index
    %c0_53 = arith.constant 0 : index
    %98 = vector.load %arg17[%c0_52, %c0_53] : memref<16x28xf32, #tpu.memory_space<vmem>>, vector<16x28xf32>
    tpu.vector_store %arg17[%c0_52, %c0_53], %97 {strides = array<i32>} : memref<16x28xf32, #tpu.memory_space<vmem>>, vector<16x28xf32>,
    return
  }
  func.func @transform_0(%arg0: i32) -> (i32, i32) {
    %c0_i32 = arith.constant 0 : i32
    %c0_i32_0 = arith.constant 0 : i32
    return %arg0, %c0_i32 : i32, i32
  }
  func.func @transform_1(%arg0: i32) -> (i32, i32) {
    %c0_i32 = arith.constant 0 : i32
    %c0_i32_0 = arith.constant 0 : i32
    return %arg0, %c0_i32 : i32, i32
  }
  func.func @transform_2(%arg0: i32) -> (i32, i32) {
    %c0_i32 = arith.constant 0 : i32
    %c0_i32_0 = arith.constant 0 : i32
    return %arg0, %c0_i32 : i32, i32
  }
  func.func @transform_3(%arg0: i32) -> (i32, i32) {
    %c0_i32 = arith.constant 0 : i32
    %c0_i32_0 = arith.constant 0 : i32
    return %arg0, %c0_i32 : i32, i32
  }
  func.func @transform_4(%arg0: i32) -> (i32, i32) {
    %c0_i32 = arith.constant 0 : i32
    %c0_i32_0 = arith.constant 0 : i32
    %c0_i32_1 = arith.constant 0 : i32
    return %c0_i32, %c0_i32_0 : i32, i32
  }
  func.func @transform_5(%arg0: i32) -> (i32, i32) {
    %c0_i32 = arith.constant 0 : i32
    %c0_i32_0 = arith.constant 0 : i32
    %c0_i32_1 = arith.constant 0 : i32
    return %c0_i32, %c0_i32_0 : i32, i32
  }
  func.func @transform_6(%arg0: i32) -> (i32, i32) {
    %c0_i32 = arith.constant 0 : i32
    %c0_i32_0 = arith.constant 0 : i32
    %c0_i32_1 = arith.constant 0 : i32
    return %c0_i32, %c0_i32_0 : i32, i32
  }
  func.func @transform_7(%arg0: i32) -> (i32, i32) {
    %c0_i32 = arith.constant 0 : i32
    %c0_i32_0 = arith.constant 0 : i32
    %c0_i32_1 = arith.constant 0 : i32
    return %c0_i32, %c0_i32_0 : i32, i32
  }
  func.func @transform_8(%arg0: i32) -> (i32, i32) {
    %c0_i32 = arith.constant 0 : i32
    %c0_i32_0 = arith.constant 0 : i32
    %c0_i32_1 = arith.constant 0 : i32
    return %c0_i32, %c0_i32_0 : i32, i32
  }
  func.func @transform_9(%arg0: i32) -> (i32, i32) {
    %c0_i32 = arith.constant 0 : i32
    %c0_i32_0 = arith.constant 0 : i32
    %c0_i32_1 = arith.constant 0 : i32
    return %c0_i32, %c0_i32_0 : i32, i32
  }
  func.func @transform_10(%arg0: i32) -> (i32, i32) {
    %c0_i32 = arith.constant 0 : i32
    %c0_i32_0 = arith.constant 0 : i32
    %c0_i32_1 = arith.constant 0 : i32
    return %c0_i32, %c0_i32_0 : i32, i32
  }
  func.func @transform_11(%arg0: i32) -> (i32, i32) {
    %c0_i32 = arith.constant 0 : i32
    %c0_i32_0 = arith.constant 0 : i32
    %c0_i32_1 = arith.constant 0 : i32
    return %c0_i32, %c0_i32_0 : i32, i32
  }
  func.func @transform_12(%arg0: i32) -> (i32, i32) {
    %c0_i32 = arith.constant 0 : i32
    %c0_i32_0 = arith.constant 0 : i32
    %c0_i32_1 = arith.constant 0 : i32
    return %c0_i32, %c0_i32_0 : i32, i32
  }
  func.func @transform_13(%arg0: i32) -> (i32, i32) {
    %c0_i32 = arith.constant 0 : i32
    %c0_i32_0 = arith.constant 0 : i32
    %c0_i32_1 = arith.constant 0 : i32
    return %c0_i32, %c0_i32_0 : i32, i32
  }
  func.func @transform_14(%arg0: i32) -> (i32, i32) {
    %c0_i32 = arith.constant 0 : i32
    %c0_i32_0 = arith.constant 0 : i32
    %c0_i32_1 = arith.constant 0 : i32
    return %c0_i32, %c0_i32_0 : i32, i32
  }
  func.func @transform_15(%arg0: i32) -> (i32, i32) {
    %c0_i32 = arith.constant 0 : i32
    %c0_i32_0 = arith.constant 0 : i32
    %c0_i32_1 = arith.constant 0 : i32
    return %c0_i32, %c0_i32_0 : i32, i32
  }
  func.func @transform_16(%arg0: i32) -> (i32, i32) {
    %c0_i32 = arith.constant 0 : i32
    %c0_i32_0 = arith.constant 0 : i32
    return %arg0, %c0_i32 : i32, i32
  }
}

</mosaic_0001>

<bundles_post_ra>
// kernel: _lambda_.3
= control target key start
LH: loop header
LB: loop body
LE: loop exit
PB: predicated region body
PF: predicated region fallthrough
CT: control target
= control target key end

     0   :  { %vm79_vm0 = vcmask 1043456   ;;  %v796_v0 = vmov 0.0   ;;  %vm797_vm1 = vmmov 0   ;;  %vm75_vm2 = vcmask 195584   ;;  %s1026_s4 = inlined_call_operand.vmem [shape: bf16[24,24], index: 4, kind: input, shape index: {}]   ;;  %s1027_s5 = inlined_call_operand.vmem [shape: bf16[24,24], index: 5, kind: input, shape index: {}]   ;;  %s1028_s1 = inlined_call_operand.vmem [shape: bf16[16,24], index: 1, kind: input, shape index: {}]   ;;  %s1029_s6 = inlined_call_operand.vmem [shape: bf16[24,8], index: 6, kind: input, shape index: {}]   ;;  %s1030_s8 = inlined_call_operand.vmem [shape: bf16[32,16], index: 8, kind: input, shape index: {}]   ;;  %s1031_s0 = inlined_call_operand.vmem [shape: bf16[16,32], index: 0, kind: input, shape index: {}]   ;;  %s1032_s9 = inlined_call_operand.vmem [shape: bf16[8,16], index: 9, kind: input, shape index: {}]   ;;  %s1033_s7 = inlined_call_operand.vmem [shape: f32[1,8], index: 7, kind: input, shape index: {}]   ;;  %s1034_s12 = inlined_call_operand.vmem [shape: bf16[16,4], index: 12, kind: input, shape index: {}]   ;;  %s1035_s11 = inlined_call_operand.vmem [shape: bf16[24,12], index: 11, kind: input, shape index: {}]   ;;  %s1036_s10 = inlined_call_operand.vmem [shape: f32[1,16], index: 10, kind: input, shape index: {}]   ;;  %s1037_s13 = inlined_call_operand.vmem [shape: f32[1,4], index: 13, kind: input, shape index: {}]   ;;  %s1038_s3 = inlined_call_operand.vmem [shape: f32[16,1], index: 3, kind: input, shape index: {}]   ;;  %s1039_s14 = inlined_call_operand.vmem [shape: f32[1,16], index: 14, kind: input, shape index: {}]   ;;  %s1040_s15 = inlined_call_operand.vmem [shape: f32[1,16], index: 15, kind: input, shape index: {}]   ;;  %s1041_s2 = inlined_call_operand.vmem [shape: f32[16,28], index: 2, kind: input, shape index: {}]   ;;  %s1042_s16 = inlined_call_operand.vmem [shape: f32[16,28], index: 16, kind: output, shape index: {}]  }
   0x1   :  { %1044 = sst [smem:[#allocation2_spill]] %s1026_s4  ;;  %697 = vmatprep.subr.bf16.mxu0 %v796_v0  ;;  %705 = vmatprep.subr.bf16.mxu1 %v796_v0  ;;  %v760_v2 = vld [vmem:[%s1027_s5 + $0x8] ss:$0 sps:$4 sm:$0xff]   ;;  %v762_v6 = vld [vmem:[%s1027_s5] sm:$0xff]   ;;  %vm320_vm3 = vcmask 261120   ;;  %vm255_vm4 = vcmask 64512  }
   0x2   :  { %s1045_s23 = sld [smem:[#allocation2_spill]]  ;;  %701 = vmatprep.mubr.msk.bf16.mxu0 %vm797_vm1, %v796_v0  ;;  %709 = vmatprep.mubr.msk.bf16.mxu1 %vm797_vm1, %v796_v0  ;;  %v137_v4 = vsel %vm79_vm0, %v760_v2, 0  ;;  %v914_v7 = vld [vmem:[%s1028_s1] sm:$0xff]   ;;  %v764_v8 = vld [vmem:[%s1029_s6 + $0x8] ss:$0 sps:$4 sm:$0xff]   ;;  %vm402_vm5 = vcmask 130048  }
   0x3   :  { %706 = vmatpush3.bf16.msra.mxu1 %v137_v4  ;;  %v206_v9 = vsel %vm79_vm0, %v764_v8, 0  ;;  %v765_v10 = vld [vmem:[%s1029_s6] sm:$0xff]   ;;  %v766_v21 = vld [vmem:[%s1030_s8 + $0x8] sm:$0xff]   ;;  %s799_s4 = smov 4   ;;  %vm529_vm6 = vcmask 31744   ;;  %s800_s1 = smov 124  }
   0x4   :  { %707 = vmatprep.subr.bf16.mxu1 %v796_v0  ;;  %v767_v23 = vld [vmem:[%s1030_s8] sm:$0xff]   ;;  %v770_v40 = vld [vmem:[%s1035_s11 + $0x8] ss:$0 sps:$4 sm:$0xff]   ;;  %s801_s5 = smov 120   ;;  %s803_s6 = smov 16   ;;  %vm646_vm7 = vcmask 228352  }
   0x5   :  { %v768_v24 = vld [vmem:[%s1031_s0] sm:$0xff]   ;;  %v472_v41 = vsel %vm79_vm0, %v770_v40, 0 }
   0x6   :  { %v254_v25 = vld [vmem:[%s1032_s9] sm:$0xf] }
   0x7   :  { %708 = vmatpush3.bf16.msra.mxu1 %v762_v6  ;;  %v260_v26 = vsel %vm79_vm0, %v254_v25, 0  ;;  %v660_v28 = vld [vmem:[%s1033_s7] ss:$0 sm:$0xff] }
   0x8   :  { %v759_v1 = vld [vmem:[%s1045_s23 + $0x8] ss:$0 sps:$4 sm:$0xff]   ;;  %v761_v5 = vld [vmem:[%s1045_s23] sm:$0xff]   ;;  %721 = vmatprep.subr.bf16.mxu1 %v796_v0 }
   0x9   :  { %v81_v3 = vsel %vm79_vm0, %v759_v1, 0  ;;  %v769_v39 = vld [vmem:[%s1034_s12] sm:$0xff]  }
   0xa   :  { %698 = vmatpush3.bf16.msra.mxu0 %v81_v3  ;;  %710 = vmatmul.mubr.msk.bf16.vlgmr.msra.gmra.mxu1 %vm75_vm2, %v914_v7  ;;  %v771_v42 = vld [vmem:[%s1035_s11] sm:$0xff]  }
   0xb   :  { %699 = vmatprep.subr.bf16.mxu0 %v796_v0  ;;  %723 = vmatprep.mubr.msk.bf16.mxu1 %vm797_vm1, %v796_v0  ;;  %v669_v44 = vld [vmem:[%s1036_s10] ss:$0 sm:$0xff] }
   0xc   :  { %722 = vmatpush3.bf16.msra.mxu1 %v260_v26  ;;  %v670_v1 = vld [vmem:[%s1037_s13] ss:$0 sm:$0xff]  ;;  %s798_s13 = smov 8  }
   0xd   :  { %735 = vmatprep.subr.bf16.mxu1 %v796_v0 }
   0xe   :  { %700 = vmatpush3.bf16.msra.mxu0 %v761_v5 }
   0xf   :  { %713 = vmatprep.subr.bf16.mxu0 %v796_v0 }
  0x11   :  { %702 = vmatmul.mubr.msk.bf16.vlgmr.msra.gmra.mxu0 %vm75_vm2, %v914_v7 }
  0x12   :  { %717 = vmatprep.mubr.msk.bf16.mxu0 %vm797_vm1, %v796_v0  ;;  %714 = vmatpush3.bf16.msra.mxu0 %v206_v9 }
  0x13   :  { %715 = vmatprep.subr.bf16.mxu0 %v796_v0 }
  0x16   :  { %716 = vmatpush3.bf16.msra.mxu0 %v765_v10 }
  0x17   :  { %727 = vmatprep.subr.bf16.mxu0 %v796_v0 }
  0xca   :  { %v173_v12 = vpop.f32.mrf.mxu1 }
  0xcc   :  { %v711_v14 = vpop.f32.mrf.mxu1 }
  0xce   :  { %v176_v16 = vpop.f32.mrf.mxu1 }
  0xd0   :  { %v712_v20 = vpop.f32.mrf.mxu1 }
  0xd1   :  { %v117_v11 = vpop.f32.mrf.mxu0 }
  0xd2   :  { %v180_v17 = vmul.f32 %v173_v12, %v117_v11 }
  0xd3   :  { %v703_v13 = vpop.f32.mrf.mxu0 }
  0xd5   :  { %v120_v15 = vpop.f32.mrf.mxu0 }
  0xd6   :  { %v181_v18 = vmul.f32 %v176_v16, %v120_v15 }
  0xd7   :  { %v704_v19 = vpop.f32.mrf.mxu0 }
  0xd8   :  { %v182_v22 = vpack.c.bf16 %v181_v18, %v180_v17 }
  0xda   :  { %718 = vmatmul.mubr.msk.bf16.vlgmr.msra.gmra.mxu0 %vm75_vm2, %v182_v22 }
  0xdb   :  { %728 = vmatpush3.bf16.msra.mxu0 %v766_v21  ;;  %731 = vmatprep.mubr.msk.bf16.mxu0 %vm797_vm1, %v796_v0 }
  0xdc   :  { %729 = vmatprep.subr.bf16.mxu0 %v796_v0 }
  0xdf   :  { %730 = vmatpush3.bf16.msra.mxu0 %v767_v23 }
  0xe0   :  { %741 = vmatprep.subr.bf16.mxu0 %v796_v0 }
  0xe2   :  { %732 = vmatmul.mubr.msk.bf16.vlgmr.msra.gmra.mxu0 %vm320_vm3, %v768_v24 }
  0xe3   :  { %745 = vmatprep.mubr.msk.bf16.mxu0 %vm797_vm1, %v796_v0  ;;  %742 = vmatpush3.bf16.msra.mxu0 %v472_v41 }
  0xe4   :  { %743 = vmatprep.subr.bf16.mxu0 %v796_v0 }
  0xe7   :  { %744 = vmatpush3.bf16.msra.mxu0 %v771_v42 }
  0xea   :  { %746 = vmatmul.mubr.msk.bf16.vlgmr.msra.gmra.mxu0 %vm75_vm2, %v914_v7 }
 0x19a   :  { %v242_v27 = vpop.f32.mrf.mxu0 }
 0x19b   :  { %v243_v31 = vadd.f32 %v660_v28, %v242_v27 }
 0x19c   :  { %v719_v29 = vpop.f32.mrf.mxu0 }
 0x19e   :  { %v245_v30 = vpop.f32.mrf.mxu0 }
 0x19f   :  { %v246_v32 = vadd.f32 %v660_v28, %v245_v30 }
 0x1a0   :  { %v720_v33 = vpop.f32.mrf.mxu0 }
 0x1a1   :  { %v253_v34 = vpack.c.bf16 %v246_v32, %v243_v31 }
 0x1a2   :  { %v358_v35 = vpop.f32.mrf.mxu0 }
 0x1a3   :  { %724 = vmatmul.mubr.msk.bf16.vlgmr.msra.gmra.mxu1 %vm255_vm4, %v253_v34 }
 0x1a4   :  { %737 = vmatprep.mubr.msk.bf16.mxu1 %vm797_vm1, %v796_v0  ;;  %v733_v36 = vpop.f32.mrf.mxu0  ;;  %736 = vmatpush3.bf16.msra.mxu1 %v769_v39 }
 0x1a6   :  { %v361_v37 = vpop.f32.mrf.mxu0 }
 0x1a8   :  { %v734_v38 = vpop.f32.mrf.mxu0 }
 0x1aa   :  { %v508_v63 = vpop.f32.mrf.mxu0 }
 0x1ac   :  { %v747_v0 = vpop.f32.mrf.mxu0 }
 0x1ae   :  { %v511_v14 = vpop.f32.mrf.mxu0 }
 0x1b0   :  { %v748_v17 = vpop.f32.mrf.mxu0 }
 0x263   :  { %v296_v43 = vpop.f32.mrf.mxu1 }
 0x264   :  { %v359_v45 = vadd.f32 %v358_v35, %v296_v43 }
 0x265   :  { %v725_v46 = vpop.f32.mrf.mxu1 }
 0x266   :  { %v978_v47 = vadd.f32 %v669_v44, %v359_v45 }
 0x267   :  { %v299_v48 = vpop.f32.mrf.mxu1 }
 0x268   :  { %v374_v49 = vsub.f32 0.0, %v978_v47  ;;  %v362_v50 = vadd.f32 %v361_v37, %v299_v48  ;;  %v536_v32 = vmax.f32 %v978_v47, 0.0  ;;  %v802_v48 = vmov 0  }
 0x269   :  { %v726_v51 = vpop.f32.mrf.mxu1  ;;  %757 = vset.pattern.permute.xlu1 %v802_v48  ;;  %758 = vset.pattern.permute.xlu0 %v802_v48 }
 0x26a   :  { %v376_v52 = vmul.f32 1.442695, %v374_v49  ;;  %v981_v53 = vadd.f32 %v669_v44, %v362_v50  ;;  %v571_v33 = vsel %vm402_vm5, %v536_v32, 0.0 }
 0x26c   :  { %772 = vpow2.f32 %v376_v52  ;;  %v375_v54 = vsub.f32 0.0, %v981_v53  ;;  %v537_v34 = vmax.f32 %v981_v53, 0.0 }
 0x26e   :  { %v378_v55 = vmul.f32 1.442695, %v375_v54  ;;  %v574_v35 = vsel %vm402_vm5, %v537_v34, 0.0 }
 0x270   :  { %774 = vpow2.f32 %v378_v55 }
 0x279   :  { %v773_v56 = vpop.eup %772 }
 0x27a   :  { %v380_v57 = vadd.f32 1.0, %v773_v56 }
 0x27c   :  { %776 = vrcp.f32 %v380_v57 }
 0x27d   :  { %v775_v58 = vpop.eup %774 }
 0x27e   :  { %v381_v59 = vadd.f32 1.0, %v775_v58 }
 0x280   :  { %778 = vrcp.f32 %v381_v59  ;;  %v632_v59 = vld [vmem:[%s1038_s3] sm:$0xff] }
 0x289   :  { %v777_v60 = vpop.eup %776 }
 0x28d   :  { %v779_v61 = vpop.eup %778 }
 0x28e   :  { %v386_v62 = vpack.c.bf16 %v779_v61, %v777_v60  ;;  %v633_v60 = vld [vmem:[%s1038_s3 + $0x8] sm:$0xff] }
 0x290   :  { %738 = vmatmul.mubr.msk.bf16.vlgmr.msra.gmra.mxu1 %vm402_vm5, %v386_v62 }
 0x350   :  { %v440_v2 = vpop.f32.mrf.mxu1 }
 0x351   :  { %v441_v3 = vadd.f32 %v670_v1, %v440_v2 }
 0x352   :  { %v739_v4 = vpop.f32.mrf.mxu1 }
 0x353   :  { %v447_v5 = vsub.f32 0.0, %v441_v3 }
 0x354   :  { %v443_v6 = vpop.f32.mrf.mxu1 }
 0x355   :  { %v449_v7 = vmul.f32 1.442695, %v447_v5  ;;  %v444_v8 = vadd.f32 %v670_v1, %v443_v6 }
 0x356   :  { %v740_v9 = vpop.f32.mrf.mxu1 }
 0x357   :  { %780 = vpow2.f32 %v449_v7  ;;  %v448_v10 = vsub.f32 0.0, %v444_v8 }
 0x359   :  { %v451_v11 = vmul.f32 1.442695, %v448_v10 }
 0x35b   :  { %782 = vpow2.f32 %v451_v11 }
 0x364   :  { %v781_v12 = vpop.eup %780 }
 0x365   :  { %v453_v13 = vadd.f32 1.0, %v781_v12 }
 0x367   :  { %784 = vrcp.f32 %v453_v13 }
 0x368   :  { %v783_v15 = vpop.eup %782 }
 0x369   :  { %v454_v16 = vadd.f32 1.0, %v783_v15 }
 0x36b   :  { %786 = vrcp.f32 %v454_v16 }
 0x374   :  { %v785_v18 = vpop.eup %784 }
 0x375   :  { %523 = vrot.lane.b32.xlu1 %v785_v18, %s798_s13  ;;  %517 = vrot.lane.b32.xlu0 %v785_v18, %s799_s4 }
 0x378   :  { %v787_v19 = vpop.eup %786 }
 0x379   :  { %525 = vrot.lane.b32.xlu1 %v787_v19, %s798_s13  ;;  %519 = vrot.lane.b32.xlu0 %v787_v19, %s799_s4 }
 0x3e7   :  { %v524_v20 = vpop.permute.xlu1 %523  ;;  %v518_v21 = vpop.permute.xlu0 %517 }
 0x3e8   :  { %v530_v22 = vsel %vm529_vm6, %v785_v18, %v518_v21  ;;  %v677_v18 = vld [vmem:[%s1040_s15] ss:$0 sm:$0xff] }
 0x3e9   :  { %v532_v23 = vsel %vm255_vm4, %v530_v22, %v524_v20  ;;  %v628_v20 = vld [vmem:[%s1041_s2] sm:$0xff] }
 0x3ea   :  { %v534_v24 = vmul.f32 %v532_v23, %v508_v63 }
 0x3eb   :  { %v526_v25 = vpop.permute.xlu1 %525  ;;  %v520_v26 = vpop.permute.xlu0 %519 }
 0x3ec   :  { %v531_v27 = vsel %vm529_vm6, %v787_v19, %v520_v26  ;;  %v538_v28 = vmul.f32 %v534_v24, %v534_v24  ;;  %v629_v26 = vld [vmem:[%s1041_s2 + $0x8] sm:$0xff] }
 0x3ed   :  { %v533_v29 = vsel %vm255_vm4, %v531_v27, %v526_v25 }
 0x3ee   :  { %v535_v30 = vmul.f32 %v533_v29, %v511_v14  ;;  %542 = vrot.lane.b32.xlu0 %v538_v28, %s800_s1  ;;  %v676_v14 = vld [vmem:[%s1039_s14] ss:$0 sm:$0xff] }
 0x3f0   :  { %v539_v31 = vmul.f32 %v535_v30, %v535_v30 }
 0x3f2   :  { %550 = vrot.lane.b32.xlu0 %v538_v28, %s801_s5  ;;  %544 = vrot.lane.b32.xlu1 %v539_v31, %s800_s1 }
 0x3f6   :  { %552 = vrot.lane.b32.xlu1 %v539_v31, %s801_s5 }
 0x411   :  { %572 = vadd.xlane.f32.xlu0 %v571_v33 }
 0x41a   :  { %575 = vadd.xlane.f32.xlu1 %v574_v35 }
 0x460   :  { %v543_v36 = vpop.permute.xlu0 %542 }
 0x461   :  { %v548_v37 = vadd.f32 %v543_v36, %v538_v28 }
 0x464   :  { %v551_v38 = vpop.permute.xlu0 %550  ;;  %v545_v39 = vpop.permute.xlu1 %544 }
 0x465   :  { %v556_v40 = vadd.f32 %v551_v38, %v548_v37  ;;  %v549_v42 = vadd.f32 %v545_v39, %v539_v31 }
 0x467   :  { %v558_v41 = vmax.f32 %v556_v40, 1e-08 }
 0x468   :  { %v553_v43 = vpop.permute.xlu1 %552 }
 0x469   :  { %v557_v44 = vadd.f32 %v553_v43, %v549_v42  ;;  %v560_v45 = vsel %vm529_vm6, %v558_v41, 0.0 }
 0x46a   :  { %561 = vadd.xlane.f32.xlu0 %v560_v45 }
 0x46b   :  { %v559_v46 = vmax.f32 %v557_v44, 1e-08 }
 0x46d   :  { %v563_v47 = vsel %vm529_vm6, %v559_v46, 0.0 }
 0x46e   :  { %564 = vadd.xlane.f32.xlu0 %v563_v47 }
 0x49a   :  { %v573_v49 = vpop.xlane.xlu0 %572 }
 0x49b   :  { %v578_v50 = vmul.f32 0.0625, %v573_v49 }
 0x49d   :  { %v580_v51 = vsub.f32 %v536_v32, %v578_v50 }
 0x49f   :  { %v582_v52 = vmul.f32 %v580_v51, %v580_v51 }
 0x4a1   :  { %v584_v53 = vsel %vm402_vm5, %v582_v52, 0.0 }
 0x4a2   :  { %585 = vadd.xlane.f32.xlu1 %v584_v53 }
 0x4a3   :  { %v576_v54 = vpop.xlane.xlu1 %575 }
 0x4a4   :  { %v579_v55 = vmul.f32 0.0625, %v576_v54 }
 0x4a6   :  { %v581_v56 = vsub.f32 %v537_v34, %v579_v55 }
 0x4a8   :  { %v583_v57 = vmul.f32 %v581_v56, %v581_v56 }
 0x4aa   :  { %v587_v58 = vsel %vm402_vm5, %v583_v57, 0.0 }
 0x4ab   :  { %588 = vadd.xlane.f32.xlu0 %v587_v58 }
 0x4b3   :  { %636 = vperm.xlu1 %757, %v632_v59  }
 0x4c1   :  { %641 = vperm.xlu0 %758, %v633_v60  }
 0x4f3   :  { %v562_v61 = vpop.xlane.xlu0 %561 }
 0x4f4   :  { %v567_v62 = vmul.f32 0.25, %v562_v61 }
 0x4f6   :  { %788 = vrsqrt.f32 %v567_v62 }
 0x4f7   :  { %v565_v63 = vpop.xlane.xlu0 %564 }
 0x4f8   :  { %v568_v0 = vmul.f32 0.25, %v565_v63 }
 0x4fa   :  { %790 = vrsqrt.f32 %v568_v0 }
 0x503   :  { %v789_v1 = vpop.eup %788 }
 0x504   :  { %v616_v2 = vmul.f32 %v789_v1, %v534_v24 }
 0x506   :  { %620 = vrot.lane.b32.xlu1 %v616_v2, %s803_s6 }
 0x507   :  { %v791_v3 = vpop.eup %790 }
 0x508   :  { %v617_v4 = vmul.f32 %v791_v3, %v535_v30 }
 0x50a   :  { %622 = vrot.lane.b32.xlu1 %v617_v4, %s803_s6 }
 0x52b   :  { %v586_v5 = vpop.xlane.xlu1 %585 }
 0x52c   :  { %v590_v6 = vmul.f32 0.0625, %v586_v5 }
 0x52e   :  { %v592_v8 = vadd.f32 1e-05, %v590_v6 }
 0x52f   :  { %v637_v15 = vpop.permute.xlu1 %636 }
 0x530   :  { %792 = vrsqrt.f32 %v592_v8 }
 0x534   :  { %v589_v7 = vpop.xlane.xlu0 %588 }
 0x535   :  { %v591_v9 = vmul.f32 0.0625, %v589_v7 }
 0x537   :  { %v593_v10 = vadd.f32 1e-05, %v591_v9 }
 0x539   :  { %794 = vrsqrt.f32 %v593_v10 }
 0x53c   :  { %v642_v30 = vpop.permute.xlu0 %641 }
 0x53d   :  { %v793_v11 = vpop.eup %792 }
 0x53e   :  { %v596_v12 = vmul.f32 %v793_v11, %v580_v51 }
 0x540   :  { %v605_v16 = vmul.f32 %v676_v14, %v596_v12 }
 0x542   :  { %v614_v19 = vadd.f32 %v677_v18, %v605_v16 }
 0x546   :  { %v795_v13 = vpop.eup %794 }
 0x547   :  { %v597_v17 = vmul.f32 %v795_v13, %v581_v56 }
 0x549   :  { %v606_v21 = vmul.f32 %v676_v14, %v597_v17 }
 0x54b   :  { %v615_v25 = vadd.f32 %v677_v18, %v606_v21 }
 0x578   :  { %v621_v22 = vpop.permute.xlu1 %620 }
 0x579   :  { %v626_v23 = vsel %vm402_vm5, %v614_v19, %v621_v22 }
 0x57a   :  { %v630_v24 = vadd.f32 %v628_v20, %v626_v23 }
 0x57c   :  { %v644_v27 = vmul.f32 %v637_v15, %v630_v24  ;;  %v623_v28 = vpop.permute.xlu1 %622 }
 0x57d   :  { %v627_v29 = vsel %vm402_vm5, %v615_v25, %v623_v28 }
 0x57e   :  { %v631_v31 = vadd.f32 %v629_v26, %v627_v29  ;;  %647 = vst.msk [vmem:[%s1042_s16] sm:$0xff] %vm646_vm7, %v644_v27 }
 0x580   :  { %v645_v32 = vmul.f32 %v642_v30, %v631_v31 }
 0x582   :  { %648 = vst.msk [vmem:[%s1042_s16 + $0x8] sm:$0xff] %vm646_vm7, %v645_v32 }

// kernel: _lambda_.2
= control target key start
LH: loop header
LB: loop body
LE: loop exit
PB: predicated region body
PF: predicated region fallthrough
CT: control target
= control target key end

     0   :  { %vm76_vm0 = vcmask 1043456   ;;  %v789_v0 = vmov 0.0   ;;  %vm790_vm1 = vmmov 0   ;;  %vm72_vm2 = vcmask 195584   ;;  %s792_s26 = smov 4   ;;  %s793_s27 = smov 124   ;;  %s1008_s3 = inlined_call_operand.vmem [shape: bf16[24,24], index: 3, kind: input, shape index: {}]   ;;  %s1009_s4 = inlined_call_operand.vmem [shape: bf16[24,24], index: 4, kind: input, shape index: {}]   ;;  %s1010_s1 = inlined_call_operand.vmem [shape: bf16[16,24], index: 1, kind: input, shape index: {}]   ;;  %s1011_s5 = inlined_call_operand.vmem [shape: bf16[24,8], index: 5, kind: input, shape index: {}]   ;;  %s1012_s7 = inlined_call_operand.vmem [shape: bf16[32,16], index: 7, kind: input, shape index: {}]   ;;  %s1013_s0 = inlined_call_operand.vmem [shape: bf16[16,32], index: 0, kind: input, shape index: {}]   ;;  %s1014_s8 = inlined_call_operand.vmem [shape: bf16[8,16], index: 8, kind: input, shape index: {}]   ;;  %s1015_s6 = inlined_call_operand.vmem [shape: f32[1,8], index: 6, kind: input, shape index: {}]   ;;  %s1016_s11 = inlined_call_operand.vmem [shape: bf16[16,4], index: 11, kind: input, shape index: {}]   ;;  %s1017_s10 = inlined_call_operand.vmem [shape: bf16[24,12], index: 10, kind: input, shape index: {}]   ;;  %s1018_s9 = inlined_call_operand.vmem [shape: f32[1,16], index: 9, kind: input, shape index: {}]   ;;  %s1019_s12 = inlined_call_operand.vmem [shape: f32[1,4], index: 12, kind: input, shape index: {}]   ;;  %s1020_s2 = inlined_call_operand.vmem [shape: f32[16,1], index: 2, kind: input, shape index: {}]   ;;  %s1021_s13 = inlined_call_operand.vmem [shape: f32[1,16], index: 13, kind: input, shape index: {}]   ;;  %s1022_s14 = inlined_call_operand.vmem [shape: f32[1,16], index: 14, kind: input, shape index: {}]   ;;  %s1023_s15 = inlined_call_operand.vmem [shape: f32[16,28], index: 15, kind: output, shape index: {}]  }
   0x1   :  { %690 = vmatprep.subr.bf16.mxu0 %v789_v0  ;;  %698 = vmatprep.subr.bf16.mxu1 %v789_v0  ;;  %v752_v1 = vld [vmem:[%s1008_s3 + $0x8] ss:$0 sps:$4 sm:$0xff]   ;;  %v754_v5 = vld [vmem:[%s1008_s3] sm:$0xff]   ;;  %vm317_vm3 = vcmask 261120   ;;  %vm252_vm4 = vcmask 64512   ;;  %vm399_vm5 = vcmask 130048  }
   0x2   :  { %v753_v2 = vld [vmem:[%s1009_s4 + $0x8] ss:$0 sps:$4 sm:$0xff]   ;;  %694 = vmatprep.mubr.msk.bf16.mxu0 %vm790_vm1, %v789_v0  ;;  %702 = vmatprep.mubr.msk.bf16.mxu1 %vm790_vm1, %v789_v0  ;;  %v78_v3 = vsel %vm76_vm0, %v752_v1, 0  ;;  %v755_v6 = vld [vmem:[%s1009_s4] sm:$0xff]   ;;  %vm526_vm6 = vcmask 31744   ;;  %s796_s30 = smov 16  }
   0x3   :  { %691 = vmatpush3.bf16.msra.mxu0 %v78_v3  ;;  %v134_v4 = vsel %vm76_vm0, %v753_v2, 0  ;;  %v902_v7 = vld [vmem:[%s1010_s1] sm:$0xff]   ;;  %v757_v8 = vld [vmem:[%s1011_s5 + $0x8] ss:$0 sps:$4 sm:$0xff]   ;;  %s794_s1 = smov 120   ;;  %vm639_vm7 = vcmask 228352  }
   0x4   :  { %699 = vmatpush3.bf16.msra.mxu1 %v134_v4  ;;  %692 = vmatprep.subr.bf16.mxu0 %v789_v0  ;;  %v203_v9 = vsel %vm76_vm0, %v757_v8, 0  ;;  %v758_v10 = vld [vmem:[%s1011_s5] sm:$0xff]   ;;  %v759_v21 = vld [vmem:[%s1012_s7 + $0x8] sm:$0xff]  }
   0x5   :  { %700 = vmatprep.subr.bf16.mxu1 %v789_v0  ;;  %v760_v23 = vld [vmem:[%s1012_s7] sm:$0xff]   ;;  %v763_v40 = vld [vmem:[%s1017_s10 + $0x8] ss:$0 sps:$4 sm:$0xff]  }
   0x6   :  { %v761_v24 = vld [vmem:[%s1013_s0] sm:$0xff]   ;;  %v469_v41 = vsel %vm76_vm0, %v763_v40, 0 }
   0x7   :  { %693 = vmatpush3.bf16.msra.mxu0 %v754_v5  ;;  %v251_v25 = vld [vmem:[%s1014_s8] sm:$0xf] }
   0x8   :  { %701 = vmatpush3.bf16.msra.mxu1 %v755_v6  ;;  %706 = vmatprep.subr.bf16.mxu0 %v789_v0  ;;  %v257_v26 = vsel %vm76_vm0, %v251_v25, 0  ;;  %v653_v28 = vld [vmem:[%s1015_s6] ss:$0 sm:$0xff] }
   0x9   :  { %714 = vmatprep.subr.bf16.mxu1 %v789_v0  ;;  %v762_v39 = vld [vmem:[%s1016_s11] sm:$0xff]  }
   0xa   :  { %695 = vmatmul.mubr.msk.bf16.vlgmr.msra.gmra.mxu0 %vm72_vm2, %v902_v7  ;;  %v764_v42 = vld [vmem:[%s1017_s10] sm:$0xff]  }
   0xb   :  { %703 = vmatmul.mubr.msk.bf16.vlgmr.msra.gmra.mxu1 %vm72_vm2, %v902_v7  ;;  %710 = vmatprep.mubr.msk.bf16.mxu0 %vm790_vm1, %v789_v0  ;;  %v662_v44 = vld [vmem:[%s1018_s9] ss:$0 sm:$0xff] }
   0xc   :  { %716 = vmatprep.mubr.msk.bf16.mxu1 %vm790_vm1, %v789_v0  ;;  %707 = vmatpush3.bf16.msra.mxu0 %v203_v9  ;;  %v663_v1 = vld [vmem:[%s1019_s12] ss:$0 sm:$0xff]  ;;  %s791_s12 = smov 8  }
   0xd   :  { %708 = vmatprep.subr.bf16.mxu0 %v789_v0  ;;  %715 = vmatpush3.bf16.msra.mxu1 %v257_v26 }
   0xe   :  { %728 = vmatprep.subr.bf16.mxu1 %v789_v0 }
  0x10   :  { %709 = vmatpush3.bf16.msra.mxu0 %v758_v10 }
  0x11   :  { %720 = vmatprep.subr.bf16.mxu0 %v789_v0 }
  0xca   :  { %v114_v11 = vpop.f32.mrf.mxu0 }
  0xcb   :  { %v170_v12 = vpop.f32.mrf.mxu1 }
  0xcc   :  { %v696_v13 = vpop.f32.mrf.mxu0  ;;  %v177_v17 = vmul.f32 %v170_v12, %v114_v11 }
  0xcd   :  { %v704_v14 = vpop.f32.mrf.mxu1 }
  0xce   :  { %v117_v15 = vpop.f32.mrf.mxu0 }
  0xcf   :  { %v173_v16 = vpop.f32.mrf.mxu1 }
  0xd0   :  { %v178_v18 = vmul.f32 %v173_v16, %v117_v15  ;;  %v697_v19 = vpop.f32.mrf.mxu0 }
  0xd1   :  { %v705_v20 = vpop.f32.mrf.mxu1 }
  0xd2   :  { %v179_v22 = vpack.c.bf16 %v178_v18, %v177_v17 }
  0xd4   :  { %711 = vmatmul.mubr.msk.bf16.vlgmr.msra.gmra.mxu0 %vm72_vm2, %v179_v22 }
  0xd5   :  { %721 = vmatpush3.bf16.msra.mxu0 %v759_v21  ;;  %724 = vmatprep.mubr.msk.bf16.mxu0 %vm790_vm1, %v789_v0 }
  0xd6   :  { %722 = vmatprep.subr.bf16.mxu0 %v789_v0 }
  0xd9   :  { %723 = vmatpush3.bf16.msra.mxu0 %v760_v23 }
  0xda   :  { %734 = vmatprep.subr.bf16.mxu0 %v789_v0 }
  0xdc   :  { %725 = vmatmul.mubr.msk.bf16.vlgmr.msra.gmra.mxu0 %vm317_vm3, %v761_v24 }
  0xdd   :  { %738 = vmatprep.mubr.msk.bf16.mxu0 %vm790_vm1, %v789_v0  ;;  %735 = vmatpush3.bf16.msra.mxu0 %v469_v41 }
  0xde   :  { %736 = vmatprep.subr.bf16.mxu0 %v789_v0 }
  0xe1   :  { %737 = vmatpush3.bf16.msra.mxu0 %v764_v42 }
  0xe4   :  { %739 = vmatmul.mubr.msk.bf16.vlgmr.msra.gmra.mxu0 %vm72_vm2, %v902_v7 }
 0x194   :  { %v239_v27 = vpop.f32.mrf.mxu0 }
 0x195   :  { %v240_v31 = vadd.f32 %v653_v28, %v239_v27 }
 0x196   :  { %v712_v29 = vpop.f32.mrf.mxu0 }
 0x198   :  { %v242_v30 = vpop.f32.mrf.mxu0 }
 0x199   :  { %v243_v32 = vadd.f32 %v653_v28, %v242_v30 }
 0x19a   :  { %v713_v33 = vpop.f32.mrf.mxu0 }
 0x19b   :  { %v250_v34 = vpack.c.bf16 %v243_v32, %v240_v31 }
 0x19c   :  { %v355_v35 = vpop.f32.mrf.mxu0 }
 0x19d   :  { %717 = vmatmul.mubr.msk.bf16.vlgmr.msra.gmra.mxu1 %vm252_vm4, %v250_v34 }
 0x19e   :  { %730 = vmatprep.mubr.msk.bf16.mxu1 %vm790_vm1, %v789_v0  ;;  %v726_v36 = vpop.f32.mrf.mxu0  ;;  %729 = vmatpush3.bf16.msra.mxu1 %v762_v39 }
 0x1a0   :  { %v358_v37 = vpop.f32.mrf.mxu0 }
 0x1a2   :  { %v727_v38 = vpop.f32.mrf.mxu0 }
 0x1a4   :  { %v505_v63 = vpop.f32.mrf.mxu0 }
 0x1a6   :  { %v740_v0 = vpop.f32.mrf.mxu0 }
 0x1a8   :  { %v508_v14 = vpop.f32.mrf.mxu0 }
 0x1aa   :  { %v741_v17 = vpop.f32.mrf.mxu0 }
 0x25d   :  { %v293_v43 = vpop.f32.mrf.mxu1 }
 0x25e   :  { %v356_v45 = vadd.f32 %v355_v35, %v293_v43 }
 0x25f   :  { %v718_v46 = vpop.f32.mrf.mxu1 }
 0x260   :  { %v966_v47 = vadd.f32 %v662_v44, %v356_v45 }
 0x261   :  { %v296_v48 = vpop.f32.mrf.mxu1 }
 0x262   :  { %v371_v49 = vsub.f32 0.0, %v966_v47  ;;  %v359_v50 = vadd.f32 %v358_v37, %v296_v48  ;;  %v533_v32 = vmax.f32 %v966_v47, 0.0  ;;  %v795_v48 = vmov 0  }
 0x263   :  { %v719_v51 = vpop.f32.mrf.mxu1  ;;  %750 = vset.pattern.permute.xlu1 %v795_v48  ;;  %751 = vset.pattern.permute.xlu0 %v795_v48 }
 0x264   :  { %v373_v52 = vmul.f32 1.442695, %v371_v49  ;;  %v969_v53 = vadd.f32 %v662_v44, %v359_v50  ;;  %v568_v33 = vsel %vm399_vm5, %v533_v32, 0.0 }
 0x266   :  { %765 = vpow2.f32 %v373_v52  ;;  %v372_v54 = vsub.f32 0.0, %v969_v53  ;;  %v534_v34 = vmax.f32 %v969_v53, 0.0 }
 0x268   :  { %v375_v55 = vmul.f32 1.442695, %v372_v54  ;;  %v571_v35 = vsel %vm399_vm5, %v534_v34, 0.0 }
 0x26a   :  { %767 = vpow2.f32 %v375_v55 }
 0x273   :  { %v766_v56 = vpop.eup %765 }
 0x274   :  { %v377_v57 = vadd.f32 1.0, %v766_v56 }
 0x276   :  { %769 = vrcp.f32 %v377_v57 }
 0x277   :  { %v768_v58 = vpop.eup %767 }
 0x278   :  { %v378_v59 = vadd.f32 1.0, %v768_v58 }
 0x27a   :  { %771 = vrcp.f32 %v378_v59  ;;  %v625_v59 = vld [vmem:[%s1020_s2] sm:$0xff] }
 0x283   :  { %v770_v60 = vpop.eup %769 }
 0x287   :  { %v772_v61 = vpop.eup %771 }
 0x288   :  { %v383_v62 = vpack.c.bf16 %v772_v61, %v770_v60  ;;  %v626_v60 = vld [vmem:[%s1020_s2 + $0x8] sm:$0xff] }
 0x28a   :  { %731 = vmatmul.mubr.msk.bf16.vlgmr.msra.gmra.mxu1 %vm399_vm5, %v383_v62 }
 0x34a   :  { %v437_v2 = vpop.f32.mrf.mxu1 }
 0x34b   :  { %v438_v3 = vadd.f32 %v663_v1, %v437_v2 }
 0x34c   :  { %v732_v4 = vpop.f32.mrf.mxu1 }
 0x34d   :  { %v444_v5 = vsub.f32 0.0, %v438_v3 }
 0x34e   :  { %v440_v6 = vpop.f32.mrf.mxu1 }
 0x34f   :  { %v446_v7 = vmul.f32 1.442695, %v444_v5  ;;  %v441_v8 = vadd.f32 %v663_v1, %v440_v6 }
 0x350   :  { %v733_v9 = vpop.f32.mrf.mxu1 }
 0x351   :  { %773 = vpow2.f32 %v446_v7  ;;  %v445_v10 = vsub.f32 0.0, %v441_v8 }
 0x353   :  { %v448_v11 = vmul.f32 1.442695, %v445_v10 }
 0x355   :  { %775 = vpow2.f32 %v448_v11 }
 0x35e   :  { %v774_v12 = vpop.eup %773 }
 0x35f   :  { %v450_v13 = vadd.f32 1.0, %v774_v12 }
 0x361   :  { %777 = vrcp.f32 %v450_v13 }
 0x362   :  { %v776_v15 = vpop.eup %775 }
 0x363   :  { %v451_v16 = vadd.f32 1.0, %v776_v15 }
 0x365   :  { %779 = vrcp.f32 %v451_v16 }
 0x36e   :  { %v778_v18 = vpop.eup %777 }
 0x36f   :  { %520 = vrot.lane.b32.xlu1 %v778_v18, %s791_s12  ;;  %514 = vrot.lane.b32.xlu0 %v778_v18, %s792_s26 }
 0x372   :  { %v780_v19 = vpop.eup %779 }
 0x373   :  { %522 = vrot.lane.b32.xlu1 %v780_v19, %s791_s12  ;;  %516 = vrot.lane.b32.xlu0 %v780_v19, %s792_s26 }
 0x3e1   :  { %v521_v20 = vpop.permute.xlu1 %520  ;;  %v515_v21 = vpop.permute.xlu0 %514 }
 0x3e2   :  { %v527_v22 = vsel %vm526_vm6, %v778_v18, %v515_v21  ;;  %v670_v18 = vld [vmem:[%s1022_s14] ss:$0 sm:$0xff] }
 0x3e3   :  { %v529_v23 = vsel %vm252_vm4, %v527_v22, %v521_v20 }
 0x3e4   :  { %v531_v24 = vmul.f32 %v529_v23, %v505_v63 }
 0x3e5   :  { %v523_v25 = vpop.permute.xlu1 %522  ;;  %v517_v26 = vpop.permute.xlu0 %516 }
 0x3e6   :  { %v528_v27 = vsel %vm526_vm6, %v780_v19, %v517_v26  ;;  %v535_v28 = vmul.f32 %v531_v24, %v531_v24 }
 0x3e7   :  { %v530_v29 = vsel %vm252_vm4, %v528_v27, %v523_v25 }
 0x3e8   :  { %v532_v30 = vmul.f32 %v530_v29, %v508_v14  ;;  %539 = vrot.lane.b32.xlu0 %v535_v28, %s793_s27  ;;  %v669_v14 = vld [vmem:[%s1021_s13] ss:$0 sm:$0xff] }
 0x3ea   :  { %v536_v31 = vmul.f32 %v532_v30, %v532_v30 }
 0x3ec   :  { %547 = vrot.lane.b32.xlu0 %v535_v28, %s794_s1  ;;  %541 = vrot.lane.b32.xlu1 %v536_v31, %s793_s27 }
 0x3f0   :  { %549 = vrot.lane.b32.xlu1 %v536_v31, %s794_s1 }
 0x40b   :  { %569 = vadd.xlane.f32.xlu0 %v568_v33 }
 0x414   :  { %572 = vadd.xlane.f32.xlu1 %v571_v35 }
 0x45a   :  { %v540_v36 = vpop.permute.xlu0 %539 }
 0x45b   :  { %v545_v37 = vadd.f32 %v540_v36, %v535_v28 }
 0x45e   :  { %v548_v38 = vpop.permute.xlu0 %547  ;;  %v542_v39 = vpop.permute.xlu1 %541 }
 0x45f   :  { %v553_v40 = vadd.f32 %v548_v38, %v545_v37  ;;  %v546_v42 = vadd.f32 %v542_v39, %v536_v31 }
 0x461   :  { %v555_v41 = vmax.f32 %v553_v40, 1e-08 }
 0x462   :  { %v550_v43 = vpop.permute.xlu1 %549 }
 0x463   :  { %v554_v44 = vadd.f32 %v550_v43, %v546_v42  ;;  %v557_v45 = vsel %vm526_vm6, %v555_v41, 0.0 }
 0x464   :  { %558 = vadd.xlane.f32.xlu0 %v557_v45 }
 0x465   :  { %v556_v46 = vmax.f32 %v554_v44, 1e-08 }
 0x467   :  { %v560_v47 = vsel %vm526_vm6, %v556_v46, 0.0 }
 0x468   :  { %561 = vadd.xlane.f32.xlu0 %v560_v47 }
 0x494   :  { %v570_v49 = vpop.xlane.xlu0 %569 }
 0x495   :  { %v575_v50 = vmul.f32 0.0625, %v570_v49 }
 0x497   :  { %v577_v51 = vsub.f32 %v533_v32, %v575_v50 }
 0x499   :  { %v579_v52 = vmul.f32 %v577_v51, %v577_v51 }
 0x49b   :  { %v581_v53 = vsel %vm399_vm5, %v579_v52, 0.0 }
 0x49c   :  { %582 = vadd.xlane.f32.xlu1 %v581_v53 }
 0x49d   :  { %v573_v54 = vpop.xlane.xlu1 %572 }
 0x49e   :  { %v576_v55 = vmul.f32 0.0625, %v573_v54 }
 0x4a0   :  { %v578_v56 = vsub.f32 %v534_v34, %v576_v55 }
 0x4a2   :  { %v580_v57 = vmul.f32 %v578_v56, %v578_v56 }
 0x4a4   :  { %v584_v58 = vsel %vm399_vm5, %v580_v57, 0.0 }
 0x4a5   :  { %585 = vadd.xlane.f32.xlu0 %v584_v58 }
 0x4ad   :  { %629 = vperm.xlu1 %750, %v625_v59  }
 0x4bb   :  { %634 = vperm.xlu0 %751, %v626_v60  }
 0x4ed   :  { %v559_v61 = vpop.xlane.xlu0 %558 }
 0x4ee   :  { %v564_v62 = vmul.f32 0.25, %v559_v61 }
 0x4f0   :  { %781 = vrsqrt.f32 %v564_v62 }
 0x4f1   :  { %v562_v63 = vpop.xlane.xlu0 %561 }
 0x4f2   :  { %v565_v0 = vmul.f32 0.25, %v562_v63 }
 0x4f4   :  { %783 = vrsqrt.f32 %v565_v0 }
 0x4fd   :  { %v782_v1 = vpop.eup %781 }
 0x4fe   :  { %v613_v2 = vmul.f32 %v782_v1, %v531_v24 }
 0x500   :  { %617 = vrot.lane.b32.xlu1 %v613_v2, %s796_s30 }
 0x501   :  { %v784_v3 = vpop.eup %783 }
 0x502   :  { %v614_v4 = vmul.f32 %v784_v3, %v532_v30 }
 0x504   :  { %619 = vrot.lane.b32.xlu1 %v614_v4, %s796_s30 }
 0x525   :  { %v583_v5 = vpop.xlane.xlu1 %582 }
 0x526   :  { %v587_v6 = vmul.f32 0.0625, %v583_v5 }
 0x528   :  { %v589_v8 = vadd.f32 1e-05, %v587_v6 }
 0x529   :  { %v630_v15 = vpop.permute.xlu1 %629 }
 0x52a   :  { %785 = vrsqrt.f32 %v589_v8 }
 0x52e   :  { %v586_v7 = vpop.xlane.xlu0 %585 }
 0x52f   :  { %v588_v9 = vmul.f32 0.0625, %v586_v7 }
 0x531   :  { %v590_v10 = vadd.f32 1e-05, %v588_v9 }
 0x533   :  { %787 = vrsqrt.f32 %v590_v10 }
 0x536   :  { %v635_v25 = vpop.permute.xlu0 %634 }
 0x537   :  { %v786_v11 = vpop.eup %785 }
 0x538   :  { %v593_v12 = vmul.f32 %v786_v11, %v577_v51 }
 0x53a   :  { %v602_v16 = vmul.f32 %v669_v14, %v593_v12 }
 0x53c   :  { %v611_v19 = vadd.f32 %v670_v18, %v602_v16 }
 0x540   :  { %v788_v13 = vpop.eup %787 }
 0x541   :  { %v594_v17 = vmul.f32 %v788_v13, %v578_v56 }
 0x543   :  { %v603_v20 = vmul.f32 %v669_v14, %v594_v17 }
 0x545   :  { %v612_v24 = vadd.f32 %v670_v18, %v603_v20 }
 0x572   :  { %v618_v21 = vpop.permute.xlu1 %617 }
 0x573   :  { %v623_v22 = vsel %vm399_vm5, %v611_v19, %v618_v21 }
 0x574   :  { %v637_v23 = vmul.f32 %v630_v15, %v623_v22 }
 0x576   :  { %640 = vst.msk [vmem:[%s1023_s15] sm:$0xff] %vm639_vm7, %v637_v23  ;;  %v620_v26 = vpop.permute.xlu1 %619 }
 0x577   :  { %v624_v27 = vsel %vm399_vm5, %v612_v24, %v620_v26 }
 0x578   :  { %v638_v28 = vmul.f32 %v635_v25, %v624_v27 }
 0x57a   :  { %641 = vst.msk [vmem:[%s1023_s15 + $0x8] sm:$0xff] %vm639_vm7, %v638_v28 }

</bundles_post_ra>
